<compile_context>
chip_gen: v5e
topology: v5e:2x2
jax: 0.10.0
libtpu: 0.0.40
codegen_flags: <defaults>
</compile_context>

<pallas_src>
import jax
import jax.numpy as jnp
from jax.experimental import pallas as pl
from jax.experimental.pallas import tpu as pltpu

LANE = 128        # TPU lane width; output slab padded to this for unmasked stores
MIN_TILE = 256    # never shrink the batch tile below this (keeps MXU M-dim full)
MAX_TILE = 2048   # activation/acc/output slabs stay < ~2.5 MiB -> VMEM-safe everywhere


def mlp_kernel(x_ref,
               w1_ref, b1_ref,
               w2_ref, b2_ref,
               w3_ref, b3_ref,
               w4_ref, b4_ref,
               wo_ref, bo_ref,
               o_ref):
    # bf16 activations feed the MXU; accumulate / bias-add / ReLU stay in f32.
    h = x_ref[...].astype(jnp.bfloat16)
    for w_ref, b_ref in ((w1_ref, b1_ref), (w2_ref, b2_ref),
                         (w3_ref, b3_ref), (w4_ref, b4_ref)):
        acc = jnp.dot(h, w_ref[...], preferred_element_type=jnp.float32) + b_ref[...]
        h = jnp.maximum(acc, 0.0).astype(jnp.bfloat16)
    # Output layer: Linear (no activation); (tile, 128) lane-dense f32 store.
    o_ref[...] = (jnp.dot(h, wo_ref[...], preferred_element_type=jnp.float32)
                  + bo_ref[...]).astype(o_ref.dtype)


def _tensorcores_per_chip():
    """Dual-TC chips (v4/v5p megacore, v7x) want grid>=2; single-TC chips want grid=1."""
    try:
        kind = jax.devices()[0].device_kind.lower()
    except Exception:
        return 1
    return 2 if any(tag in kind for tag in ("v4", "v5p", "v7")) else 1


def _choose_batch_tile(B):
    n_cores = _tensorcores_per_chip()
    tile = -(-B // n_cores)                    # ceil(B / n_cores) -> grid == n_cores
    tile = -(-tile // MIN_TILE) * MIN_TILE     # round up to a multiple of 256
    return max(MIN_TILE, min(tile, MAX_TILE))


def init_params(key, input_dim, output_dim, n_units):
    """Deterministic init mimicking nn.Linear's default U(-1/sqrt(fan_in), +1/sqrt(fan_in)).
    Weights stored as (fan_in, fan_out); biases as (1, fan_out) for 2-D VMEM residency."""
    dims = [(input_dim, n_units), (n_units, n_units),
            (n_units, n_units), (n_units, n_units), (n_units, output_dim)]
    params = []
    for (fi, fo) in dims:
        key, kw, kb = jax.random.split(key, 3)
        bound = 1.0 / jnp.sqrt(jnp.float32(fi))
        w = jax.random.uniform(kw, (fi, fo), jnp.float32, -bound, bound)
        b = jax.random.uniform(kb, (1, fo), jnp.float32, -bound, bound)
        params.append((w, b))
    return params


def prepare_params(params):
    """One-time (not per-call) preparation:
      * pad the output layer to a full 128-lane slab BEFORE the bf16 cast so the
        padded columns are exactly zero,
      * cast the MXU-feeding weight matrices to bf16 (biases stay f32 on the
        accumulate path).
    Returns (prepared_param_tuple, d_out)."""
    (w1, b1), (w2, b2), (w3, b3), (w4, b4), (wo, bo) = params
    d_out = wo.shape[1]
    n_out = -(-d_out // LANE) * LANE
    wo_p = jnp.pad(wo, ((0, 0), (0, n_out - d_out)))
    bo_p = jnp.pad(bo, ((0, 0), (0, n_out - d_out)))
    to_bf16 = lambda a: a.astype(jnp.bfloat16)
    prepped = (to_bf16(w1), b1, to_bf16(w2), b2, to_bf16(w3), b3,
               to_bf16(w4), b4, to_bf16(wo_p), bo_p)
    return prepped, d_out


def net_forward(x, prepped, d_out, *, batch_tile=None):
    """Fused 5-layer MLP forward. x: (B, input_dim) f32. Returns (B, d_out) f32."""
    w1b, b1, w2b, b2, w3b, b3, w4b, b4, wob, bo_p = prepped
    B, d_in = x.shape
    H = w1b.shape[1]
    n_out = wob.shape[1]

    tile = batch_tile if batch_tile is not None else _choose_batch_tile(B)
    B_pad = -(-B // tile) * tile
    if B_pad != B:
        x = jnp.pad(x, ((0, B_pad - B), (0, 0)))

    grid = (B_pad // tile,)

    def const_spec(shape):
        # Grid-invariant operand: constant index_map -> DMA'd into VMEM once and
        # reused every grid step.  (If a Mosaic dump ever shows per-step refetch,
        # switch these to memory_space=pl.ANY + a one-time manual copy.)
        return pl.BlockSpec(shape, lambda i: (0, 0))

    in_specs = [
        pl.BlockSpec((tile, d_in), lambda i: (i, 0)),   # x tile
        const_spec(w1b.shape), const_spec(b1.shape),
        const_spec(w2b.shape), const_spec(b2.shape),
        const_spec(w3b.shape), const_spec(b3.shape),
        const_spec(w4b.shape), const_spec(b4.shape),
        const_spec(wob.shape), const_spec(bo_p.shape),
    ]
    out_spec = pl.BlockSpec((tile, n_out), lambda i: (i, 0))

    # Honest cost estimate: real d_out FLOPs, actual (padded) output bytes written.
    flops = 2 * B_pad * (d_in * H + 3 * H * H + H * d_out)
    param_bytes = sum(int(a.size) * a.dtype.itemsize
                      for a in (w1b, b1, w2b, b2, w3b, b3, w4b, b4, wob, bo_p))
    bytes_accessed = B_pad * d_in * 4 + B_pad * n_out * 4 + param_bytes

    out = pl.pallas_call(
        mlp_kernel,
        out_shape=jax.ShapeDtypeStruct((B_pad, n_out), jnp.float32),
        grid_spec=pltpu.PrefetchScalarGridSpec(
            num_scalar_prefetch=0,
            grid=grid,
            in_specs=in_specs,
            out_specs=out_spec,
        ),
        compiler_params=pltpu.CompilerParams(
            dimension_semantics=("parallel",)),
        cost_estimate=pl.CostEstimate(
            flops=flops, transcendentals=0, bytes_accessed=bytes_accessed),
    )(x, w1b, b1, w2b, b2, w3b, b3, w4b, b4, wob, bo_p)

    return out[:B, :d_out]


def reference_forward_bf16(x, params):
    """Pure-JAX reference matching the kernel's bf16-matmul / f32-accumulate scheme."""
    (w1, b1), (w2, b2), (w3, b3), (w4, b4), (wo, bo) = params
    h = x
    for (w, b) in [(w1, b1), (w2, b2), (w3, b3), (w4, b4)]:
        h = jnp.maximum(
            jnp.dot(h.astype(jnp.bfloat16), w.astype(jnp.bfloat16),
                    preferred_element_type=jnp.float32) + b, 0.0)
    return (jnp.dot(h.astype(jnp.bfloat16), wo.astype(jnp.bfloat16),
                    preferred_element_type=jnp.float32) + bo)


if __name__ == "__main__":
    # Shapes consistent with the module: Net(input_dim=8, output_dim=4, n_units=128).
    # batch=512 -> grid=(1,) on single-TC v5e/v6e (tile 512), grid=(2,) on dual-TC v7x.
    input_dim, output_dim, n_units = 8, 4, 128
    batch = 512

    key = jax.random.PRNGKey(0)
    key, kx = jax.random.split(key)
    x = jax.random.normal(kx, (batch, input_dim), jnp.float32)
    params = init_params(key, input_dim, output_dim, n_units)

    # One-time param prep (bf16 cast + output-layer lane padding) kept off the hot path.
    prepped, d_out = prepare_params(params)

    fwd = jax.jit(lambda xx, pp: net_forward(xx, pp, d_out))
    out = jax.block_until_ready(fwd(x, prepped))

    ref = reference_forward_bf16(x, params)
    assert out.shape == (batch, output_dim)
    assert jnp.allclose(out, ref, atol=1e-2, rtol=1e-2), "mismatch vs reference"

    print("KERNEL_OK")
</pallas_src>

<mosaic_0001>
module attributes {stable_mosaic.version = 11 : i64} {
  func.func @mlp_kernel(%arg0: i32, %arg1: memref<512x8xf32, #tpu.memory_space<vmem>>, %arg2: memref<8x128xbf16, #tpu.memory_space<vmem>>, %arg3: memref<1x128xf32, #tpu.memory_space<vmem>>, %arg4: memref<128x128xbf16, #tpu.memory_space<vmem>>, %arg5: memref<1x128xf32, #tpu.memory_space<vmem>>, %arg6: memref<128x128xbf16, #tpu.memory_space<vmem>>, %arg7: memref<1x128xf32, #tpu.memory_space<vmem>>, %arg8: memref<128x128xbf16, #tpu.memory_space<vmem>>, %arg9: memref<1x128xf32, #tpu.memory_space<vmem>>, %arg10: memref<128x128xbf16, #tpu.memory_space<vmem>>, %arg11: memref<1x128xf32, #tpu.memory_space<vmem>>, %arg12: memref<512x128xf32, #tpu.memory_space<vmem>>) attributes {dimension_semantics = [#tpu.dimension_semantics<parallel>], iteration_bounds = array<i64: 1>, scalar_prefetch = 0 : i64, scratch_operands = 0 : i64, tpu.core_type = #tpu.core_type<tc>, window_params = [{transform_indices = @transform_0, window_bounds = array<i64: 512, 8>}, {pipeline_mode = #tpu.pipeline_mode<synchronous>, transform_indices = @transform_1, window_bounds = array<i64: 8, 128>}, {pipeline_mode = #tpu.pipeline_mode<synchronous>, transform_indices = @transform_2, window_bounds = array<i64: 1, 128>}, {pipeline_mode = #tpu.pipeline_mode<synchronous>, transform_indices = @transform_3, window_bounds = array<i64: 128, 128>}, {pipeline_mode = #tpu.pipeline_mode<synchronous>, transform_indices = @transform_4, window_bounds = array<i64: 1, 128>}, {pipeline_mode = #tpu.pipeline_mode<synchronous>, transform_indices = @transform_5, window_bounds = array<i64: 128, 128>}, {pipeline_mode = #tpu.pipeline_mode<synchronous>, transform_indices = @transform_6, window_bounds = array<i64: 1, 128>}, {pipeline_mode = #tpu.pipeline_mode<synchronous>, transform_indices = @transform_7, window_bounds = array<i64: 128, 128>}, {pipeline_mode = #tpu.pipeline_mode<synchronous>, transform_indices = @transform_8, window_bounds = array<i64: 1, 128>}, {pipeline_mode = #tpu.pipeline_mode<synchronous>, transform_indices = @transform_9, window_bounds = array<i64: 128, 128>}, {pipeline_mode = #tpu.pipeline_mode<synchronous>, transform_indices = @transform_10, window_bounds = array<i64: 1, 128>}, {transform_indices = @transform_11, window_bounds = array<i64: 512, 128>}]} {
    %c0 = arith.constant 0 : index
    %c0_0 = arith.constant 0 : index
    %0 = vector.load %arg1[%c0, %c0_0] : memref<512x8xf32, #tpu.memory_space<vmem>>, vector<512x8xf32>
    %1 = arith.truncf %0 : vector<512x8xf32> to vector<512x8xbf16>
    %c0_1 = arith.constant 0 : index
    %c0_2 = arith.constant 0 : index
    %2 = vector.load %arg2[%c0_1, %c0_2] : memref<8x128xbf16, #tpu.memory_space<vmem>>, vector<8x128xbf16>
    %cst = arith.constant dense<0.000000e+00> : vector<512x128xf32>
    %3 = tpu.matmul %1, %2, %cst {dimension_numbers = #tpu.dot_dimension_numbers<[1], [0], [0], [1], [0, 0, 1, 1], [], []>} : vector<512x8xbf16>, vector<8x128xbf16>, vector<512x128xf32> -> vector<512x128xf32>
    %c0_3 = arith.constant 0 : index
    %c0_4 = arith.constant 0 : index
    %4 = vector.load %arg3[%c0_3, %c0_4] : memref<1x128xf32, #tpu.memory_space<vmem>>, vector<1x128xf32>
    %5 = vector.broadcast %4 : vector<1x128xf32> to vector<512x128xf32>
    %6 = arith.addf %3, %5 : vector<512x128xf32>
    %cst_5 = arith.constant 0.000000e+00 : f32
    %7 = vector.broadcast %cst_5 : f32 to vector<512x128xf32>
    %8 = arith.maximumf %6, %7 : vector<512x128xf32>
    %9 = arith.truncf %8 : vector<512x128xf32> to vector<512x128xbf16>
    %c0_6 = arith.constant 0 : index
    %c0_7 = arith.constant 0 : index
    %10 = vector.load %arg4[%c0_6, %c0_7] : memref<128x128xbf16, #tpu.memory_space<vmem>>, vector<128x128xbf16>
    %cst_8 = arith.constant dense<0.000000e+00> : vector<512x128xf32>
    %11 = tpu.matmul %9, %10, %cst_8 {dimension_numbers = #tpu.dot_dimension_numbers<[1], [0], [0], [1], [0, 0, 1, 1], [], []>} : vector<512x128xbf16>, vector<128x128xbf16>, vector<512x128xf32> -> vector<512x128xf32>
    %c0_9 = arith.constant 0 : index
    %c0_10 = arith.constant 0 : index
    %12 = vector.load %arg5[%c0_9, %c0_10] : memref<1x128xf32, #tpu.memory_space<vmem>>, vector<1x128xf32>
    %13 = vector.broadcast %12 : vector<1x128xf32> to vector<512x128xf32>
    %14 = arith.addf %11, %13 : vector<512x128xf32>
    %cst_11 = arith.constant 0.000000e+00 : f32
    %15 = vector.broadcast %cst_11 : f32 to vector<512x128xf32>
    %16 = arith.maximumf %14, %15 : vector<512x128xf32>
    %17 = arith.truncf %16 : vector<512x128xf32> to vector<512x128xbf16>
    %c0_12 = arith.constant 0 : index
    %c0_13 = arith.constant 0 : index
    %18 = vector.load %arg6[%c0_12, %c0_13] : memref<128x128xbf16, #tpu.memory_space<vmem>>, vector<128x128xbf16>
    %cst_14 = arith.constant dense<0.000000e+00> : vector<512x128xf32>
    %19 = tpu.matmul %17, %18, %cst_14 {dimension_numbers = #tpu.dot_dimension_numbers<[1], [0], [0], [1], [0, 0, 1, 1], [], []>} : vector<512x128xbf16>, vector<128x128xbf16>, vector<512x128xf32> -> vector<512x128xf32>
    %c0_15 = arith.constant 0 : index
    %c0_16 = arith.constant 0 : index
    %20 = vector.load %arg7[%c0_15, %c0_16] : memref<1x128xf32, #tpu.memory_space<vmem>>, vector<1x128xf32>
    %21 = vector.broadcast %20 : vector<1x128xf32> to vector<512x128xf32>
    %22 = arith.addf %19, %21 : vector<512x128xf32>
    %cst_17 = arith.constant 0.000000e+00 : f32
    %23 = vector.broadcast %cst_17 : f32 to vector<512x128xf32>
    %24 = arith.maximumf %22, %23 : vector<512x128xf32>
    %25 = arith.truncf %24 : vector<512x128xf32> to vector<512x128xbf16>
    %c0_18 = arith.constant 0 : index
    %c0_19 = arith.constant 0 : index
    %26 = vector.load %arg8[%c0_18, %c0_19] : memref<128x128xbf16, #tpu.memory_space<vmem>>, vector<128x128xbf16>
    %cst_20 = arith.constant dense<0.000000e+00> : vector<512x128xf32>
    %27 = tpu.matmul %25, %26, %cst_20 {dimension_numbers = #tpu.dot_dimension_numbers<[1], [0], [0], [1], [0, 0, 1, 1], [], []>} : vector<512x128xbf16>, vector<128x128xbf16>, vector<512x128xf32> -> vector<512x128xf32>
    %c0_21 = arith.constant 0 : index
    %c0_22 = arith.constant 0 : index
    %28 = vector.load %arg9[%c0_21, %c0_22] : memref<1x128xf32, #tpu.memory_space<vmem>>, vector<1x128xf32>
    %29 = vector.broadcast %28 : vector<1x128xf32> to vector<512x128xf32>
    %30 = arith.addf %27, %29 : vector<512x128xf32>
    %cst_23 = arith.constant 0.000000e+00 : f32
    %31 = vector.broadcast %cst_23 : f32 to vector<512x128xf32>
    %32 = arith.maximumf %30, %31 : vector<512x128xf32>
    %33 = arith.truncf %32 : vector<512x128xf32> to vector<512x128xbf16>
    %c0_24 = arith.constant 0 : index
    %c0_25 = arith.constant 0 : index
    %34 = vector.load %arg10[%c0_24, %c0_25] : memref<128x128xbf16, #tpu.memory_space<vmem>>, vector<128x128xbf16>
    %cst_26 = arith.constant dense<0.000000e+00> : vector<512x128xf32>
    %35 = tpu.matmul %33, %34, %cst_26 {dimension_numbers = #tpu.dot_dimension_numbers<[1], [0], [0], [1], [0, 0, 1, 1], [], []>} : vector<512x128xbf16>, vector<128x128xbf16>, vector<512x128xf32> -> vector<512x128xf32>
    %c0_27 = arith.constant 0 : index
    %c0_28 = arith.constant 0 : index
    %36 = vector.load %arg11[%c0_27, %c0_28] : memref<1x128xf32, #tpu.memory_space<vmem>>, vector<1x128xf32>
    %37 = vector.broadcast %36 : vector<1x128xf32> to vector<512x128xf32>
    %38 = arith.addf %35, %37 : vector<512x128xf32>
    %c0_29 = arith.constant 0 : index
    %c0_30 = arith.constant 0 : index
    %39 = vector.load %arg12[%c0_29, %c0_30] : memref<512x128xf32, #tpu.memory_space<vmem>>, vector<512x128xf32>
    tpu.vector_store %arg12[%c0_29, %c0_30], %38 {strides = array<i32>} : memref<512x128xf32, #tpu.memory_space<vmem>>, vector<512x128xf32>,
    return
  }
  func.func @transform_0(%arg0: i32) -> (i32, i32) {
    %c0_i32 = arith.constant 0 : i32
    %c0_i32_0 = arith.constant 0 : i32
    return %arg0, %c0_i32 : i32, i32
  }
  func.func @transform_1(%arg0: i32) -> (i32, i32) {
    %c0_i32 = arith.constant 0 : i32
    %c0_i32_0 = arith.constant 0 : i32
    %c0_i32_1 = arith.constant 0 : i32
    return %c0_i32, %c0_i32_0 : i32, i32
  }
  func.func @transform_2(%arg0: i32) -> (i32, i32) {
    %c0_i32 = arith.constant 0 : i32
    %c0_i32_0 = arith.constant 0 : i32
    %c0_i32_1 = arith.constant 0 : i32
    return %c0_i32, %c0_i32_0 : i32, i32
  }
  func.func @transform_3(%arg0: i32) -> (i32, i32) {
    %c0_i32 = arith.constant 0 : i32
    %c0_i32_0 = arith.constant 0 : i32
    %c0_i32_1 = arith.constant 0 : i32
    return %c0_i32, %c0_i32_0 : i32, i32
  }
  func.func @transform_4(%arg0: i32) -> (i32, i32) {
    %c0_i32 = arith.constant 0 : i32
    %c0_i32_0 = arith.constant 0 : i32
    %c0_i32_1 = arith.constant 0 : i32
    return %c0_i32, %c0_i32_0 : i32, i32
  }
  func.func @transform_5(%arg0: i32) -> (i32, i32) {
    %c0_i32 = arith.constant 0 : i32
    %c0_i32_0 = arith.constant 0 : i32
    %c0_i32_1 = arith.constant 0 : i32
    return %c0_i32, %c0_i32_0 : i32, i32
  }
  func.func @transform_6(%arg0: i32) -> (i32, i32) {
    %c0_i32 = arith.constant 0 : i32
    %c0_i32_0 = arith.constant 0 : i32
    %c0_i32_1 = arith.constant 0 : i32
    return %c0_i32, %c0_i32_0 : i32, i32
  }
  func.func @transform_7(%arg0: i32) -> (i32, i32) {
    %c0_i32 = arith.constant 0 : i32
    %c0_i32_0 = arith.constant 0 : i32
    %c0_i32_1 = arith.constant 0 : i32
    return %c0_i32, %c0_i32_0 : i32, i32
  }
  func.func @transform_8(%arg0: i32) -> (i32, i32) {
    %c0_i32 = arith.constant 0 : i32
    %c0_i32_0 = arith.constant 0 : i32
    %c0_i32_1 = arith.constant 0 : i32
    return %c0_i32, %c0_i32_0 : i32, i32
  }
  func.func @transform_9(%arg0: i32) -> (i32, i32) {
    %c0_i32 = arith.constant 0 : i32
    %c0_i32_0 = arith.constant 0 : i32
    %c0_i32_1 = arith.constant 0 : i32
    return %c0_i32, %c0_i32_0 : i32, i32
  }
  func.func @transform_10(%arg0: i32) -> (i32, i32) {
    %c0_i32 = arith.constant 0 : i32
    %c0_i32_0 = arith.constant 0 : i32
    %c0_i32_1 = arith.constant 0 : i32
    return %c0_i32, %c0_i32_0 : i32, i32
  }
  func.func @transform_11(%arg0: i32) -> (i32, i32) {
    %c0_i32 = arith.constant 0 : i32
    %c0_i32_0 = arith.constant 0 : i32
    return %arg0, %c0_i32 : i32, i32
  }
}

</mosaic_0001>

<bundles_post_ra>
// kernel: _lambda_.1
= control target key start
LH: loop header
LB: loop body
LE: loop exit
PB: predicated region body
PF: predicated region fallthrough
CT: control target
= control target key end

     0   :  { %vm237_vm0 = vcmask 1043456   ;;  %vm140_vm1 = vcmask 64512   ;;  %s3069_s1 = inlined_call_operand.vmem [shape: bf16[8,128], index: 1, kind: input, shape index: {}]   ;;  %s3070_s0 = inlined_call_operand.vmem [shape: f32[512,8], index: 0, kind: input, shape index: {}]   ;;  %s3071_s3 = inlined_call_operand.vmem [shape: bf16[128,128], index: 3, kind: input, shape index: {}]   ;;  %s3072_s2 = inlined_call_operand.vmem [shape: f32[1,128], index: 2, kind: input, shape index: {}]   ;;  %s3073_s5 = inlined_call_operand.vmem [shape: bf16[128,128], index: 5, kind: input, shape index: {}]   ;;  %s3074_s4 = inlined_call_operand.vmem [shape: f32[1,128], index: 4, kind: input, shape index: {}]   ;;  %s3075_s6 = inlined_call_operand.vmem [shape: f32[1,128], index: 6, kind: input, shape index: {}]   ;;  %s3076_s7 = inlined_call_operand.vmem [shape: bf16[128,128], index: 7, kind: input, shape index: {}]   ;;  %s3077_s9 = inlined_call_operand.vmem [shape: bf16[128,128], index: 9, kind: input, shape index: {}]   ;;  %s3078_s8 = inlined_call_operand.vmem [shape: f32[1,128], index: 8, kind: input, shape index: {}]   ;;  %s3079_s10 = inlined_call_operand.vmem [shape: f32[1,128], index: 10, kind: input, shape index: {}]   ;;  %s3080_s11 = inlined_call_operand.vmem [shape: f32[512,128], index: 11, kind: output, shape index: {}]  }
   0x1   :  { %v135_v0 = vld [vmem:[%s3069_s1] sm:$0xf]  ;;  %v40_v2 = vld [vmem:[%s3070_s0 + $0x8] sm:$0xff]  ;;  %v57_v5 = vld [vmem:[%s3070_s0 + $0x90] sm:$0xff] }
   0x2   :  { %v39_v1 = vld [vmem:[%s3070_s0] sm:$0xff]  ;;  %v239_v3 = vsel %vm237_vm0, %v135_v0, 0  ;;  %v58_v6 = vld [vmem:[%s3070_s0 + $0x98] sm:$0xff]  ;;  %v1976_v9 = vld [vmem:[%s3071_s3 + $0x30] sm:$0xff] }
   0x3   :  { %v103_v4 = vpack.c.bf16 %v40_v2, %v39_v1  ;;  %v1977_v7 = vld [vmem:[%s3071_s3 + $0x38] sm:$0xff]  ;;  %248 = vmatpush.bf16.msra.mxu0 %v239_v3  ;;  %2002 = vmatpush.bf16.msra.mxu1 %v239_v3  ;;  %v112_v8 = vpack.c.bf16 %v58_v6, %v57_v5  ;;  %v1975_v10 = vld [vmem:[%s3071_s3 + $0x28] sm:$0xff]  ;;  %v41_v11 = vld [vmem:[%s3070_s0 + $0x10] sm:$0xff] }
   0x4   :  { %2003 = vmatpush.bf16.msra.mxu2 %v239_v3  ;;  %2004 = vmatpush.bf16.msra.mxu3 %v239_v3  ;;  %v42_v12 = vld [vmem:[%s3070_s0 + $0x18] sm:$0xff]  ;;  %v59_v13 = vld [vmem:[%s3070_s0 + $0xa0] sm:$0xff]  ;;  %v60_v14 = vld [vmem:[%s3070_s0 + $0xa8] sm:$0xff] }
   0x5   :  { %v104_v15 = vpack.c.bf16 %v42_v12, %v41_v11  ;;  %v113_v16 = vpack.c.bf16 %v60_v14, %v59_v13  ;;  %v1974_v17 = vld [vmem:[%s3071_s3 + $0x20] sm:$0xff]  ;;  %v44_v19 = vld [vmem:[%s3070_s0 + $0x28] sm:$0xff]  ;;  %v61_v20 = vld [vmem:[%s3070_s0 + $0xb0] sm:$0xff] }
   0x6   :  { %1810 = vmatmul.msk.bf16.vlgmr.msra.gmra.mxu0 %vm140_vm1, %v103_v4  ;;  %1819 = vmatmul.msk.bf16.vlgmr.msra.gmra.mxu1 %vm140_vm1, %v112_v8  ;;  %v43_v18 = vld [vmem:[%s3070_s0 + $0x20] sm:$0xff]  ;;  %v62_v21 = vld [vmem:[%s3070_s0 + $0xb8] sm:$0xff]  ;;  %v45_v25 = vld [vmem:[%s3070_s0 + $0x30] sm:$0xff] }
   0x7   :  { %574 = vmatpush.bf16.msrb.mxu1 %v1977_v7  ;;  %v105_v22 = vpack.c.bf16 %v44_v19, %v43_v18  ;;  %v114_v23 = vpack.c.bf16 %v62_v21, %v61_v20  ;;  %v1973_v24 = vld [vmem:[%s3071_s3 + $0x18] sm:$0xff]  ;;  %v63_v27 = vld [vmem:[%s3070_s0 + $0xc0] sm:$0xff]  ;;  %v64_v28 = vld [vmem:[%s3070_s0 + $0xc8] sm:$0xff] }
   0x8   :  { %v46_v26 = vld [vmem:[%s3070_s0 + $0x38] sm:$0xff]  ;;  %v115_v30 = vpack.c.bf16 %v64_v28, %v63_v27  ;;  %v1972_v31 = vld [vmem:[%s3071_s3 + $0x10] sm:$0xff]  ;;  %v47_v32 = vld [vmem:[%s3070_s0 + $0x40] sm:$0xff] }
   0x9   :  { %v106_v29 = vpack.c.bf16 %v46_v26, %v45_v25  ;;  %v48_v33 = vld [vmem:[%s3070_s0 + $0x48] sm:$0xff]  ;;  %v65_v34 = vld [vmem:[%s3070_s0 + $0xd0] sm:$0xff]  ;;  %v66_v35 = vld [vmem:[%s3070_s0 + $0xd8] sm:$0xff] }
   0xa   :  { %v107_v36 = vpack.c.bf16 %v48_v33, %v47_v32  ;;  %v116_v37 = vpack.c.bf16 %v66_v35, %v65_v34  ;;  %v1971_v38 = vld [vmem:[%s3071_s3 + $0x8] sm:$0xff]  ;;  %v49_v39 = vld [vmem:[%s3070_s0 + $0x50] sm:$0xff]  ;;  %v50_v40 = vld [vmem:[%s3070_s0 + $0x58] sm:$0xff] }
   0xb   :  { %575 = vmatpush.bf16.msrb.mxu1 %v1976_v9  ;;  %v67_v41 = vld [vmem:[%s3070_s0 + $0xe0] sm:$0xff]  ;;  %v68_v42 = vld [vmem:[%s3070_s0 + $0xe8] sm:$0xff]  ;;  %v108_v43 = vpack.c.bf16 %v50_v40, %v49_v39  ;;  %v69_v47 = vld [vmem:[%s3070_s0 + $0xf0] sm:$0xff] }
   0xc   :  { %v117_v44 = vpack.c.bf16 %v68_v42, %v67_v41  ;;  %v51_v45 = vld [vmem:[%s3070_s0 + $0x60] sm:$0xff]  ;;  %v52_v46 = vld [vmem:[%s3070_s0 + $0x68] sm:$0xff]  ;;  %v70_v48 = vld [vmem:[%s3070_s0 + $0xf8] sm:$0xff] }
   0xd   :  { %v109_v49 = vpack.c.bf16 %v52_v46, %v51_v45  ;;  %v118_v50 = vpack.c.bf16 %v70_v48, %v69_v47  ;;  %v1970_v51 = vld [vmem:[%s3071_s3] sm:$0xff]  ;;  %v53_v52 = vld [vmem:[%s3070_s0 + $0x70] sm:$0xff]  ;;  %v54_v53 = vld [vmem:[%s3070_s0 + $0x78] sm:$0xff] }
   0xe   :  { %v71_v54 = vld [vmem:[%s3070_s0 + $0x100] sm:$0xff]  ;;  %v72_v55 = vld [vmem:[%s3070_s0 + $0x108] sm:$0xff]  ;;  %v110_v56 = vpack.c.bf16 %v54_v53, %v53_v52  ;;  %v1985_v62 = vld [vmem:[%s3073_s5 + $0x38] sm:$0xff] }
   0xf   :  { %576 = vmatpush.bf16.msrb.mxu1 %v1975_v10  ;;  %v119_v57 = vpack.c.bf16 %v72_v55, %v71_v54  ;;  %v75_v58 = vld [vmem:[%s3070_s0 + $0x120] sm:$0xff]  ;;  %v76_v59 = vld [vmem:[%s3070_s0 + $0x128] sm:$0xff]  ;;  %v73_v0 = vld [vmem:[%s3070_s0 + $0x110] sm:$0xff]  ;;  %907 = vmatpush.bf16.msrb.mxu2 %v1985_v62 }
  0x10   :  { %v121_v60 = vpack.c.bf16 %v76_v59, %v75_v58  ;;  %v55_v61 = vld [vmem:[%s3070_s0 + $0x80] sm:$0xff]  ;;  %v56_v63 = vld [vmem:[%s3070_s0 + $0x88] sm:$0xff]  ;;  %v74_v1 = vld [vmem:[%s3070_s0 + $0x118] sm:$0xff] }
  0x11   :  { %v111_v2 = vpack.c.bf16 %v56_v63, %v55_v61  ;;  %v120_v3 = vpack.c.bf16 %v74_v1, %v73_v0  ;;  %v2247_v6 = vld [vmem:[%s3072_s2] ss:$0 sm:$0xff]  ;;  %v77_v7 = vld [vmem:[%s3070_s0 + $0x130] sm:$0xff]  ;;  %v78_v8 = vld [vmem:[%s3070_s0 + $0x138] sm:$0xff] }
  0x12   :  { %1828 = vmatmul.msk.bf16.vlgmr.msra.gmra.mxu2 %vm140_vm1, %v121_v60  ;;  %v122_v9 = vpack.c.bf16 %v78_v8, %v77_v7  ;;  %v1984_v18 = vld [vmem:[%s3073_s5 + $0x30] sm:$0xff]  ;;  %v79_v25 = vld [vmem:[%s3070_s0 + $0x140] sm:$0xff]  ;;  %v80_v26 = vld [vmem:[%s3070_s0 + $0x148] sm:$0xff] }
  0x13   :  { %577 = vmatpush.bf16.msrb.mxu1 %v1974_v17  ;;  %908 = vmatpush.bf16.msrb.mxu2 %v1984_v18  ;;  %v123_v27 = vpack.c.bf16 %v80_v26, %v79_v25  ;;  %v1982_v54 = vld [vmem:[%s3073_s5 + $0x20] sm:$0xff]  ;;  %v84_v62 = vld [vmem:[%s3070_s0 + $0x168] sm:$0xff] }
  0x14   :  { %v83_v61 = vld [vmem:[%s3070_s0 + $0x160] sm:$0xff] }
  0x15   :  { %v125_v63 = vpack.c.bf16 %v84_v62, %v83_v61 }
  0x16   :  { %1811 = vmatmul.msk.bf16.gmra.mxu0 %vm140_vm1, %v104_v15  ;;  %1820 = vmatmul.msk.bf16.gmra.mxu1 %vm140_vm1, %v113_v16 }
  0x17   :  { %578 = vmatpush.bf16.msrb.mxu1 %v1973_v24 }
  0x1b   :  { %579 = vmatpush.bf16.msrb.mxu1 %v1972_v31 }
  0x1f   :  { %580 = vmatpush.bf16.msrb.mxu1 %v1971_v38 }
  0x22   :  { %1829 = vmatmul.msk.bf16.gmra.mxu2 %vm140_vm1, %v122_v9  ;;  %v1981_v9 = vld [vmem:[%s3073_s5 + $0x18] sm:$0xff] }
  0x23   :  { %581 = vmatpush.bf16.msrb.mxu1 %v1970_v51 }
  0x26   :  { %1812 = vmatmul.msk.bf16.gmra.mxu0 %vm140_vm1, %v105_v22  ;;  %1821 = vmatmul.msk.bf16.gmra.mxu1 %vm140_vm1, %v114_v23 }
  0x32   :  { %1830 = vmatmul.msk.bf16.gmra.mxu2 %vm140_vm1, %v123_v27 }
  0x36   :  { %1813 = vmatmul.msk.bf16.gmra.mxu0 %vm140_vm1, %v106_v29  ;;  %1822 = vmatmul.msk.bf16.gmra.mxu1 %vm140_vm1, %v115_v30 }
  0x46   :  { %1814 = vmatmul.msk.bf16.gmra.mxu0 %vm140_vm1, %v107_v36  ;;  %1823 = vmatmul.msk.bf16.gmra.mxu1 %vm140_vm1, %v116_v37  ;;  %v1983_v36 = vld [vmem:[%s3073_s5 + $0x28] sm:$0xff] }
  0x47   :  { %909 = vmatpush.bf16.msrb.mxu2 %v1983_v36  ;;  %v88_v36 = vld [vmem:[%s3070_s0 + $0x188] sm:$0xff] }
  0x4b   :  { %910 = vmatpush.bf16.msrb.mxu2 %v1982_v54  ;;  %v89_v54 = vld [vmem:[%s3070_s0 + $0x190] sm:$0xff] }
  0x4f   :  { %911 = vmatpush.bf16.msrb.mxu2 %v1981_v9 }
  0x56   :  { %1815 = vmatmul.msk.bf16.gmra.mxu0 %vm140_vm1, %v108_v43  ;;  %1824 = vmatmul.msk.bf16.gmra.mxu1 %vm140_vm1, %v117_v44  ;;  %v81_v43 = vld [vmem:[%s3070_s0 + $0x150] sm:$0xff]  ;;  %v82_v44 = vld [vmem:[%s3070_s0 + $0x158] sm:$0xff] }
  0x57   :  { %v124_v45 = vpack.c.bf16 %v82_v44, %v81_v43 }
  0x59   :  { %1831 = vmatmul.msk.bf16.gmra.mxu2 %vm140_vm1, %v124_v45 }
  0x66   :  { %1816 = vmatmul.msk.bf16.gmra.mxu0 %vm140_vm1, %v109_v49  ;;  %1825 = vmatmul.msk.bf16.gmra.mxu1 %vm140_vm1, %v118_v50 }
  0x69   :  { %1832 = vmatmul.msk.bf16.gmra.mxu2 %vm140_vm1, %v125_v63 }
  0x76   :  { %1817 = vmatmul.msk.bf16.gmra.mxu0 %vm140_vm1, %v110_v56  ;;  %1826 = vmatmul.msk.bf16.gmra.mxu1 %vm140_vm1, %v119_v57 }
  0x83   :  { %v250_v4 = vpop.f32.mrf.mxu0  ;;  %v295_v5 = vpop.f32.mrf.mxu1 }
  0x84   :  { %v296_v10 = vadd.f32 %v2247_v6, %v295_v5  ;;  %v251_v15 = vadd.f32 %v2247_v6, %v250_v4 }
  0x86   :  { %1818 = vmatmul.msk.bf16.gmra.mxu0 %vm140_vm1, %v111_v2  ;;  %1827 = vmatmul.msk.bf16.gmra.mxu1 %vm140_vm1, %v120_v3  ;;  %v428_v16 = vmax.f32 %v296_v10, 0.0  ;;  %v410_v21 = vmax.f32 %v251_v15, 0.0 }
  0x8b   :  { %v252_v11 = vpop.f32.mrf.mxu0  ;;  %v297_v12 = vpop.f32.mrf.mxu1 }
  0x8c   :  { %v253_v13 = vadd.f32 %v2247_v6, %v252_v11  ;;  %v298_v14 = vadd.f32 %v2247_v6, %v297_v12 }
  0x8e   :  { %v429_v17 = vmax.f32 %v298_v14, 0.0  ;;  %v411_v19 = vmax.f32 %v253_v13, 0.0 }
  0x90   :  { %v2265_v20 = vpack.c.bf16 %v429_v17, %v428_v16  ;;  %v474_v24 = vpack.c.bf16 %v411_v19, %v410_v21  ;;  %v85_v16 = vld [vmem:[%s3070_s0 + $0x170] sm:$0xff]  ;;  %v86_v17 = vld [vmem:[%s3070_s0 + $0x178] sm:$0xff] }
  0x91   :  { %v126_v18 = vpack.c.bf16 %v86_v17, %v85_v16 }
  0x93   :  { %v255_v22 = vpop.f32.mrf.mxu0  ;;  %v300_v23 = vpop.f32.mrf.mxu1  ;;  %1833 = vmatmul.msk.bf16.gmra.mxu2 %vm140_vm1, %v126_v18 }
  0x94   :  { %v301_v28 = vadd.f32 %v2247_v6, %v300_v23  ;;  %v256_v33 = vadd.f32 %v2247_v6, %v255_v22 }
  0x96   :  { %582 = vmatmul.bf16.vlgmr.msrb.gmra.mxu1 %v474_v24  ;;  %v430_v34 = vmax.f32 %v301_v28, 0.0  ;;  %v412_v39 = vmax.f32 %v256_v33, 0.0  ;;  %v1980_v28 = vld [vmem:[%s3073_s5 + $0x10] sm:$0xff] }
  0x97   :  { %912 = vmatpush.bf16.msrb.mxu2 %v1980_v28 }
  0x9b   :  { %v257_v29 = vpop.f32.mrf.mxu0  ;;  %v302_v30 = vpop.f32.mrf.mxu1 }
  0x9c   :  { %v258_v31 = vadd.f32 %v2247_v6, %v257_v29  ;;  %v303_v32 = vadd.f32 %v2247_v6, %v302_v30 }
  0x9e   :  { %v431_v35 = vmax.f32 %v303_v32, 0.0  ;;  %v413_v37 = vmax.f32 %v258_v31, 0.0 }
  0xa0   :  { %v2281_v38 = vpack.c.bf16 %v431_v35, %v430_v34  ;;  %v475_v42 = vpack.c.bf16 %v413_v37, %v412_v39  ;;  %v87_v35 = vld [vmem:[%s3070_s0 + $0x180] sm:$0xff] }
  0xa1   :  { %v127_v37 = vpack.c.bf16 %v88_v36, %v87_v35 }
  0xa3   :  { %v260_v40 = vpop.f32.mrf.mxu0  ;;  %v305_v41 = vpop.f32.mrf.mxu1  ;;  %1834 = vmatmul.msk.bf16.gmra.mxu2 %vm140_vm1, %v127_v37 }
  0xa4   :  { %v306_v46 = vadd.f32 %v2247_v6, %v305_v41  ;;  %v261_v51 = vadd.f32 %v2247_v6, %v260_v40 }
  0xa6   :  { %587 = vmatmul.bf16.gmra.mxu1 %v475_v42  ;;  %v432_v52 = vmax.f32 %v306_v46, 0.0  ;;  %v414_v57 = vmax.f32 %v261_v51, 0.0 }
  0xab   :  { %v262_v47 = vpop.f32.mrf.mxu0  ;;  %v307_v48 = vpop.f32.mrf.mxu1 }
  0xac   :  { %v263_v49 = vadd.f32 %v2247_v6, %v262_v47  ;;  %v308_v50 = vadd.f32 %v2247_v6, %v307_v48  ;;  %v1979_v47 = vld [vmem:[%s3073_s5 + $0x8] sm:$0xff] }
  0xad   :  { %913 = vmatpush.bf16.msrb.mxu2 %v1979_v47 }
  0xae   :  { %v433_v53 = vmax.f32 %v308_v50, 0.0  ;;  %v415_v55 = vmax.f32 %v263_v49, 0.0 }
  0xb0   :  { %v2297_v56 = vpack.c.bf16 %v433_v53, %v432_v52  ;;  %v476_v60 = vpack.c.bf16 %v415_v55, %v414_v57  ;;  %v90_v55 = vld [vmem:[%s3070_s0 + $0x198] sm:$0xff] }
  0xb1   :  { %v128_v57 = vpack.c.bf16 %v90_v55, %v89_v54  ;;  %v91_v54 = vld [vmem:[%s3070_s0 + $0x1a0] sm:$0xff]  ;;  %v92_v55 = vld [vmem:[%s3070_s0 + $0x1a8] sm:$0xff] }
  0xb3   :  { %v265_v58 = vpop.f32.mrf.mxu0  ;;  %v310_v59 = vpop.f32.mrf.mxu1  ;;  %1835 = vmatmul.msk.bf16.gmra.mxu2 %vm140_vm1, %v128_v57 }
  0xb4   :  { %v311_v0 = vadd.f32 %v2247_v6, %v310_v59  ;;  %v266_v5 = vadd.f32 %v2247_v6, %v265_v58 }
  0xb6   :  { %592 = vmatmul.bf16.gmra.mxu1 %v476_v60  ;;  %v434_v7 = vmax.f32 %v311_v0, 0.0  ;;  %v416_v12 = vmax.f32 %v266_v5, 0.0 }
  0xbb   :  { %v267_v1 = vpop.f32.mrf.mxu0  ;;  %v312_v2 = vpop.f32.mrf.mxu1 }
  0xbc   :  { %v268_v3 = vadd.f32 %v2247_v6, %v267_v1  ;;  %v313_v4 = vadd.f32 %v2247_v6, %v312_v2  ;;  %v1978_v2 = vld [vmem:[%s3073_s5] sm:$0xff] }
  0xbd   :  { %914 = vmatpush.bf16.msrb.mxu2 %v1978_v2 }
  0xbe   :  { %v435_v8 = vmax.f32 %v313_v4, 0.0  ;;  %v417_v10 = vmax.f32 %v268_v3, 0.0 }
  0xc0   :  { %v2313_v11 = vpack.c.bf16 %v435_v8, %v434_v7  ;;  %v477_v15 = vpack.c.bf16 %v417_v10, %v416_v12 }
  0xc3   :  { %v270_v13 = vpop.f32.mrf.mxu0  ;;  %v315_v14 = vpop.f32.mrf.mxu1 }
  0xc4   :  { %v316_v19 = vadd.f32 %v2247_v6, %v315_v14  ;;  %v271_v25 = vadd.f32 %v2247_v6, %v270_v13 }
  0xc6   :  { %597 = vmatmul.bf16.gmra.mxu1 %v477_v15  ;;  %v436_v26 = vmax.f32 %v316_v19, 0.0  ;;  %v418_v31 = vmax.f32 %v271_v25, 0.0 }
  0xcb   :  { %v272_v21 = vpop.f32.mrf.mxu0  ;;  %v317_v22 = vpop.f32.mrf.mxu1 }
  0xcc   :  { %v273_v23 = vadd.f32 %v2247_v6, %v272_v21  ;;  %v318_v24 = vadd.f32 %v2247_v6, %v317_v22 }
  0xce   :  { %v437_v27 = vmax.f32 %v318_v24, 0.0  ;;  %v419_v29 = vmax.f32 %v273_v23, 0.0 }
  0xd0   :  { %v2329_v30 = vpack.c.bf16 %v437_v27, %v436_v26  ;;  %v478_v34 = vpack.c.bf16 %v419_v29, %v418_v31  ;;  %v2369_v26 = vpop.f32.mrf.mxu2 }
  0xd3   :  { %v275_v32 = vpop.f32.mrf.mxu0  ;;  %v320_v33 = vpop.f32.mrf.mxu1 }
  0xd4   :  { %v321_v39 = vadd.f32 %v2247_v6, %v320_v33  ;;  %v276_v44 = vadd.f32 %v2247_v6, %v275_v32 }
  0xd6   :  { %602 = vmatmul.bf16.gmra.mxu1 %v478_v34  ;;  %v438_v45 = vmax.f32 %v321_v39, 0.0  ;;  %v420_v50 = vmax.f32 %v276_v44, 0.0 }
  0xd8   :  { %v2377_v39 = vpop.f32.mrf.mxu2 }
  0xdb   :  { %v277_v40 = vpop.f32.mrf.mxu0  ;;  %v322_v41 = vpop.f32.mrf.mxu1 }
  0xdc   :  { %v278_v42 = vadd.f32 %v2247_v6, %v277_v40  ;;  %v323_v43 = vadd.f32 %v2247_v6, %v322_v41 }
  0xde   :  { %v439_v46 = vmax.f32 %v323_v43, 0.0  ;;  %v421_v48 = vmax.f32 %v278_v42, 0.0  ;;  %v2382_v43 = vld [vmem:[%s3074_s4] ss:$0 sm:$0xff] }
  0xe0   :  { %v2345_v49 = vpack.c.bf16 %v439_v46, %v438_v45  ;;  %v479_v53 = vpack.c.bf16 %v421_v48, %v420_v50  ;;  %v2385_v46 = vpop.f32.mrf.mxu2 }
  0xe3   :  { %v280_v51 = vpop.f32.mrf.mxu0  ;;  %v325_v52 = vpop.f32.mrf.mxu1 }
  0xe4   :  { %v326_v58 = vadd.f32 %v2247_v6, %v325_v52  ;;  %v281_v63 = vadd.f32 %v2247_v6, %v280_v51 }
  0xe6   :  { %607 = vmatmul.bf16.gmra.mxu1 %v479_v53  ;;  %v440_v0 = vmax.f32 %v326_v58, 0.0  ;;  %v422_v5 = vmax.f32 %v281_v63, 0.0  ;;  %v129_v58 = vpack.c.bf16 %v92_v55, %v91_v54 }
  0xe8   :  { %v2388_v53 = vpop.f32.mrf.mxu2  ;;  %1836 = vmatmul.msk.bf16.vlgmr.msra.gmra.mxu3 %vm140_vm1, %v129_v58 }
  0xeb   :  { %v282_v59 = vpop.f32.mrf.mxu0  ;;  %v327_v60 = vpop.f32.mrf.mxu1 }
  0xec   :  { %v283_v61 = vadd.f32 %v2247_v6, %v282_v59  ;;  %v328_v62 = vadd.f32 %v2247_v6, %v327_v60 }
  0xee   :  { %v441_v1 = vmax.f32 %v328_v62, 0.0  ;;  %v423_v3 = vmax.f32 %v283_v61, 0.0 }
  0xf0   :  { %v2361_v4 = vpack.c.bf16 %v441_v1, %v440_v0  ;;  %v480_v9 = vpack.c.bf16 %v423_v3, %v422_v5  ;;  %v2400_v63 = vpop.f32.mrf.mxu2  ;;  %v1993_v1 = vld [vmem:[%s3076_s7 + $0x38] sm:$0xff]  ;;  %v93_v3 = vld [vmem:[%s3070_s0 + $0x1b0] sm:$0xff] }
  0xf1   :  { %1240 = vmatpush.bf16.msrb.mxu3 %v1993_v1  ;;  %v94_v5 = vld [vmem:[%s3070_s0 + $0x1b8] sm:$0xff]  ;;  %v101_v1 = vld [vmem:[%s3070_s0 + $0x1f0] sm:$0xff] }
  0xf3   :  { %v285_v7 = vpop.f32.mrf.mxu0  ;;  %v330_v8 = vpop.f32.mrf.mxu1 }
  0xf4   :  { %v331_v10 = vadd.f32 %v2247_v6, %v330_v8  ;;  %v286_v16 = vadd.f32 %v2247_v6, %v285_v7  ;;  %v130_v8 = vpack.c.bf16 %v94_v5, %v93_v3  ;;  %v102_v3 = vld [vmem:[%s3070_s0 + $0x1f8] sm:$0xff] }
  0xf6   :  { %612 = vmatmul.bf16.gmra.mxu1 %v480_v9  ;;  %v442_v17 = vmax.f32 %v331_v10, 0.0  ;;  %v424_v22 = vmax.f32 %v286_v16, 0.0 }
  0xf8   :  { %v2406_v2 = vpop.f32.mrf.mxu2  ;;  %1837 = vmatmul.msk.bf16.gmra.mxu3 %vm140_vm1, %v130_v8 }
  0xfb   :  { %v287_v12 = vpop.f32.mrf.mxu0  ;;  %v332_v13 = vpop.f32.mrf.mxu1 }
  0xfc   :  { %v288_v14 = vadd.f32 %v2247_v6, %v287_v12  ;;  %v333_v15 = vadd.f32 %v2247_v6, %v332_v13  ;;  %v1992_v13 = vld [vmem:[%s3076_s7 + $0x30] sm:$0xff] }
  0xfd   :  { %1241 = vmatpush.bf16.msrb.mxu3 %v1992_v13 }
  0xfe   :  { %v443_v18 = vmax.f32 %v333_v15, 0.0  ;;  %v425_v19 = vmax.f32 %v288_v14, 0.0 }
 0x100   :  { %v2367_v21 = vpack.c.bf16 %v443_v18, %v442_v17  ;;  %v481_v25 = vpack.c.bf16 %v425_v19, %v424_v22  ;;  %v2420_v16 = vpop.f32.mrf.mxu2  ;;  %v95_v17 = vld [vmem:[%s3070_s0 + $0x1c0] sm:$0xff]  ;;  %v96_v18 = vld [vmem:[%s3070_s0 + $0x1c8] sm:$0xff] }
 0x101   :  { %v131_v22 = vpack.c.bf16 %v96_v18, %v95_v17 }
 0x103   :  { %v290_v23 = vpop.f32.mrf.mxu0  ;;  %v335_v24 = vpop.f32.mrf.mxu1 }
 0x104   :  { %v336_v27 = vadd.f32 %v2247_v6, %v335_v24  ;;  %v291_v33 = vadd.f32 %v2247_v6, %v290_v23 }
 0x106   :  { %617 = vmatmul.bf16.gmra.mxu1 %v481_v25  ;;  %v444_v34 = vmax.f32 %v336_v27, 0.0  ;;  %v426_v40 = vmax.f32 %v291_v33, 0.0 }
 0x108   :  { %1838 = vmatmul.msk.bf16.gmra.mxu3 %vm140_vm1, %v131_v22  ;;  %v2432_v25 = vpop.f32.mrf.mxu2 }
 0x10b   :  { %v292_v28 = vpop.f32.mrf.mxu0  ;;  %v337_v29 = vpop.f32.mrf.mxu1 }
 0x10c   :  { %v293_v31 = vadd.f32 %v2247_v6, %v292_v28  ;;  %v338_v32 = vadd.f32 %v2247_v6, %v337_v29  ;;  %v1991_v28 = vld [vmem:[%s3076_s7 + $0x28] sm:$0xff] }
 0x10d   :  { %1242 = vmatpush.bf16.msrb.mxu3 %v1991_v28 }
 0x10e   :  { %v445_v35 = vmax.f32 %v338_v32, 0.0  ;;  %v427_v36 = vmax.f32 %v293_v31, 0.0  ;;  %v1990_v32 = vld [vmem:[%s3076_s7 + $0x20] sm:$0xff] }
 0x110   :  { %v2375_v37 = vpack.c.bf16 %v445_v35, %v444_v34  ;;  %v482_v42 = vpack.c.bf16 %v427_v36, %v426_v40  ;;  %v2441_v33 = vpop.f32.mrf.mxu2  ;;  %v97_v34 = vld [vmem:[%s3070_s0 + $0x1d0] sm:$0xff]  ;;  %v98_v35 = vld [vmem:[%s3070_s0 + $0x1d8] sm:$0xff] }
 0x111   :  { %1243 = vmatpush.bf16.msrb.mxu3 %v1990_v32  ;;  %v132_v40 = vpack.c.bf16 %v98_v35, %v97_v34 }
 0x113   :  { %v583_v41 = vpop.f32.mrf.mxu1 }
 0x114   :  { %v584_v44 = vadd.f32 %v2382_v43, %v583_v41 }
 0x116   :  { %622 = vmatmul.bf16.gmra.mxu1 %v482_v42  ;;  %v743_v48 = vmax.f32 %v584_v44, 0.0 }
 0x118   :  { %1839 = vmatmul.msk.bf16.gmra.mxu3 %vm140_vm1, %v132_v40 }
 0x11b   :  { %v585_v45 = vpop.f32.mrf.mxu1 }
 0x11c   :  { %v586_v47 = vadd.f32 %v2382_v43, %v585_v45 }
 0x11e   :  { %v744_v50 = vmax.f32 %v586_v47, 0.0  ;;  %v2452_v47 = vpop.f32.mrf.mxu2 }
 0x120   :  { %v807_v51 = vpack.c.bf16 %v744_v50, %v743_v48  ;;  %v1989_v50 = vld [vmem:[%s3076_s7 + $0x18] sm:$0xff] }
 0x121   :  { %1244 = vmatpush.bf16.msrb.mxu3 %v1989_v50 }
 0x122   :  { %915 = vmatmul.bf16.vlgmr.msrb.gmra.mxu2 %v807_v51  ;;  %v99_v51 = vld [vmem:[%s3070_s0 + $0x1e0] sm:$0xff] }
 0x123   :  { %v588_v52 = vpop.f32.mrf.mxu1 }
 0x124   :  { %v589_v57 = vadd.f32 %v2382_v43, %v588_v52  ;;  %v100_v52 = vld [vmem:[%s3070_s0 + $0x1e8] sm:$0xff] }
 0x125   :  { %v133_v55 = vpack.c.bf16 %v100_v52, %v99_v51 }
 0x126   :  { %627 = vmatmul.bf16.gmra.mxu1 %v2265_v20  ;;  %v745_v61 = vmax.f32 %v589_v57, 0.0  ;;  %v2465_v58 = vpop.f32.mrf.mxu2 }
 0x128   :  { %1840 = vmatmul.msk.bf16.gmra.mxu3 %vm140_vm1, %v133_v55  ;;  %v2001_v55 = vld [vmem:[%s3077_s9 + $0x38] sm:$0xff] }
 0x129   :  { %1573 = vmatpush.bf16.msrb.mxu0 %v2001_v55 }
 0x12b   :  { %v590_v59 = vpop.f32.mrf.mxu1 }
 0x12c   :  { %v591_v60 = vadd.f32 %v2382_v43, %v590_v59 }
 0x12e   :  { %v746_v62 = vmax.f32 %v591_v60, 0.0 }
 0x130   :  { %v808_v20 = vpack.c.bf16 %v746_v62, %v745_v61  ;;  %v1988_v61 = vld [vmem:[%s3076_s7 + $0x10] sm:$0xff] }
 0x131   :  { %1245 = vmatpush.bf16.msrb.mxu3 %v1988_v61 }
 0x132   :  { %920 = vmatmul.bf16.gmra.mxu2 %v808_v20 }
 0x133   :  { %v593_v0 = vpop.f32.mrf.mxu1 }
 0x134   :  { %v594_v7 = vadd.f32 %v2382_v43, %v593_v0  ;;  %v2472_v0 = vpop.f32.mrf.mxu2 }
 0x136   :  { %632 = vmatmul.bf16.gmra.mxu1 %v2281_v38  ;;  %v747_v10 = vmax.f32 %v594_v7, 0.0  ;;  %v134_v7 = vpack.c.bf16 %v102_v3, %v101_v1  ;;  %v346_v3 = vadd.f32 %v2247_v6, %v2385_v46  ;;  %v2000_v46 = vld [vmem:[%s3077_s9 + $0x30] sm:$0xff] }
 0x137   :  { %1574 = vmatpush.bf16.msrb.mxu0 %v2000_v46 }
 0x138   :  { %1841 = vmatmul.msk.bf16.gmra.mxu3 %vm140_vm1, %v134_v7  ;;  %v348_v7 = vadd.f32 %v2247_v6, %v2388_v53 }
 0x13b   :  { %v595_v9 = vpop.f32.mrf.mxu1 }
 0x13c   :  { %v596_v38 = vadd.f32 %v2382_v43, %v595_v9 }
 0x13e   :  { %v748_v12 = vmax.f32 %v596_v38, 0.0 }
 0x140   :  { %v809_v14 = vpack.c.bf16 %v748_v12, %v747_v10  ;;  %v2487_v12 = vpop.f32.mrf.mxu2 }
 0x142   :  { %925 = vmatmul.bf16.gmra.mxu2 %v809_v14 }
 0x143   :  { %v598_v15 = vpop.f32.mrf.mxu1 }
 0x144   :  { %v599_v19 = vadd.f32 %v2382_v43, %v598_v15  ;;  %v1986_v15 = vld [vmem:[%s3076_s7] sm:$0xff] }
 0x146   :  { %637 = vmatmul.bf16.gmra.mxu1 %v2297_v56  ;;  %v749_v27 = vmax.f32 %v599_v19, 0.0 }
 0x148   :  { %v2493_v17 = vpop.f32.mrf.mxu2 }
 0x14b   :  { %v600_v23 = vpop.f32.mrf.mxu1 }
 0x14c   :  { %v601_v24 = vadd.f32 %v2382_v43, %v600_v23 }
 0x14e   :  { %v750_v56 = vmax.f32 %v601_v24, 0.0 }
 0x150   :  { %v810_v29 = vpack.c.bf16 %v750_v56, %v749_v27  ;;  %v2497_v56 = vpop.f32.mrf.mxu2 }
 0x152   :  { %930 = vmatmul.bf16.gmra.mxu2 %v810_v29 }
 0x153   :  { %v603_v31 = vpop.f32.mrf.mxu1 }
 0x154   :  { %v604_v36 = vadd.f32 %v2382_v43, %v603_v31 }
 0x156   :  { %642 = vmatmul.bf16.gmra.mxu1 %v2313_v11  ;;  %v751_v42 = vmax.f32 %v604_v36, 0.0 }
 0x158   :  { %v2502_v32 = vpop.f32.mrf.mxu2 }
 0x15b   :  { %v605_v41 = vpop.f32.mrf.mxu1 }
 0x15c   :  { %v606_v11 = vadd.f32 %v2382_v43, %v605_v41 }
 0x15e   :  { %v752_v44 = vmax.f32 %v606_v11, 0.0  ;;  %v2508_v11 = vld [vmem:[%s3075_s6] ss:$0 sm:$0xff] }
 0x160   :  { %v811_v45 = vpack.c.bf16 %v752_v44, %v751_v42  ;;  %v341_v42 = vadd.f32 %v2247_v6, %v2369_v26 }
 0x162   :  { %935 = vmatmul.bf16.gmra.mxu2 %v811_v45  ;;  %v343_v45 = vadd.f32 %v2247_v6, %v2377_v39 }
 0x163   :  { %v608_v48 = vpop.f32.mrf.mxu1 }
 0x164   :  { %v609_v54 = vadd.f32 %v2382_v43, %v608_v48 }
 0x166   :  { %647 = vmatmul.bf16.gmra.mxu1 %v2329_v30  ;;  %v753_v59 = vmax.f32 %v609_v54, 0.0 }
 0x16b   :  { %v610_v57 = vpop.f32.mrf.mxu1 }
 0x16c   :  { %v611_v30 = vadd.f32 %v2382_v43, %v610_v57  ;;  %v446_v57 = vmax.f32 %v341_v42, 0.0 }
 0x16e   :  { %v754_v60 = vmax.f32 %v611_v30, 0.0  ;;  %v447_v30 = vmax.f32 %v343_v45, 0.0 }
 0x170   :  { %v812_v62 = vpack.c.bf16 %v754_v60, %v753_v59 }
 0x172   :  { %940 = vmatmul.bf16.gmra.mxu2 %v812_v62  ;;  %v492_v62 = vpack.c.bf16 %v447_v30, %v446_v57 }
 0x173   :  { %v613_v20 = vpop.f32.mrf.mxu1 }
 0x174   :  { %v614_v5 = vadd.f32 %v2382_v43, %v613_v20 }
 0x176   :  { %652 = vmatmul.bf16.gmra.mxu1 %v2345_v49  ;;  %v755_v38 = vmax.f32 %v614_v5, 0.0  ;;  %v1987_v49 = vld [vmem:[%s3076_s7 + $0x8] sm:$0xff] }
 0x177   :  { %1246 = vmatpush.bf16.msrb.mxu3 %v1987_v49 }
 0x17b   :  { %v615_v8 = vpop.f32.mrf.mxu1  ;;  %1247 = vmatpush.bf16.msrb.mxu3 %v1986_v15  ;;  %v449_v15 = vmax.f32 %v348_v7, 0.0 }
 0x17c   :  { %v616_v9 = vadd.f32 %v2382_v43, %v615_v8 }
 0x17e   :  { %v756_v10 = vmax.f32 %v616_v9, 0.0 }
 0x17f   :  { %2005 = vmatpush.bf16.msra.mxu3 %v2001_v55 }
 0x180   :  { %v813_v13 = vpack.c.bf16 %v756_v10, %v755_v38 }
 0x182   :  { %945 = vmatmul.bf16.gmra.mxu2 %v813_v13 }
 0x183   :  { %v618_v14 = vpop.f32.mrf.mxu1  ;;  %2006 = vmatpush.bf16.msra.mxu3 %v2000_v46  ;;  %v363_v46 = vadd.f32 %v2247_v6, %v2452_v47 }
 0x184   :  { %v619_v18 = vadd.f32 %v2382_v43, %v618_v14  ;;  %v448_v14 = vmax.f32 %v346_v3, 0.0 }
 0x186   :  { %657 = vmatmul.bf16.gmra.mxu1 %v2361_v4  ;;  %v757_v23 = vmax.f32 %v619_v18, 0.0 }
 0x18b   :  { %v620_v19 = vpop.f32.mrf.mxu1 }
 0x18c   :  { %v621_v22 = vadd.f32 %v2382_v43, %v620_v19 }
 0x18e   :  { %v758_v24 = vmax.f32 %v621_v22, 0.0 }
 0x190   :  { %v814_v27 = vpack.c.bf16 %v758_v24, %v757_v23  ;;  %v2532_v23 = vpop.f32.mrf.mxu3 }
 0x192   :  { %950 = vmatmul.bf16.gmra.mxu2 %v814_v27  ;;  %v493_v27 = vpack.c.bf16 %v449_v15, %v448_v14 }
 0x193   :  { %v623_v28 = vpop.f32.mrf.mxu1 }
 0x194   :  { %v624_v4 = vadd.f32 %v2382_v43, %v623_v28 }
 0x196   :  { %662 = vmatmul.bf16.gmra.mxu1 %v2367_v21  ;;  %v759_v34 = vmax.f32 %v624_v4, 0.0 }
 0x19b   :  { %v625_v29 = vpop.f32.mrf.mxu1 }
 0x19c   :  { %v626_v31 = vadd.f32 %v2382_v43, %v625_v29  ;;  %v351_v29 = vadd.f32 %v2247_v6, %v2400_v63 }
 0x19e   :  { %v760_v35 = vmax.f32 %v626_v31, 0.0  ;;  %v450_v45 = vmax.f32 %v351_v29, 0.0 }
 0x1a0   :  { %v815_v36 = vpack.c.bf16 %v760_v35, %v759_v34  ;;  %v2537_v34 = vpop.f32.mrf.mxu3  ;;  %v353_v35 = vadd.f32 %v2247_v6, %v2406_v2 }
 0x1a2   :  { %955 = vmatmul.bf16.gmra.mxu2 %v815_v36 }
 0x1a3   :  { %v628_v40 = vpop.f32.mrf.mxu1 }
 0x1a4   :  { %v629_v21 = vadd.f32 %v2382_v43, %v628_v40 }
 0x1a5   :  { %v916_v41 = vpop.f32.mrf.mxu2 }
 0x1a6   :  { %667 = vmatmul.bf16.gmra.mxu1 %v2375_v37  ;;  %v917_v48 = vadd.f32 %v2508_v11, %v916_v41  ;;  %v761_v37 = vmax.f32 %v629_v21, 0.0 }
 0x1a8   :  { %v1076_v26 = vmax.f32 %v917_v48, 0.0  ;;  %v451_v48 = vmax.f32 %v353_v35, 0.0  ;;  %v2547_v57 = vpop.f32.mrf.mxu3  ;;  %v455_v35 = vmax.f32 %v363_v46, 0.0 }
 0x1ab   :  { %v630_v44 = vpop.f32.mrf.mxu1 }
 0x1ac   :  { %v631_v50 = vadd.f32 %v2382_v43, %v630_v44 }
 0x1ad   :  { %v918_v51 = vpop.f32.mrf.mxu2 }
 0x1ae   :  { %v762_v52 = vmax.f32 %v631_v50, 0.0  ;;  %v919_v54 = vadd.f32 %v2508_v11, %v918_v51 }
 0x1b0   :  { %v1077_v59 = vmax.f32 %v919_v54, 0.0  ;;  %v816_v60 = vpack.c.bf16 %v762_v52, %v761_v37  ;;  %v1999_v37 = vld [vmem:[%s3077_s9 + $0x28] sm:$0xff]  ;;  %v494_v54 = vpack.c.bf16 %v451_v48, %v450_v45  ;;  %v2557_v7 = vpop.f32.mrf.mxu3  ;;  %v1997_v45 = vld [vmem:[%s3077_s9 + $0x18] sm:$0xff] }
 0x1b1   :  { %1575 = vmatpush.bf16.msrb.mxu0 %v1999_v37  ;;  %2007 = vmatpush.bf16.msra.mxu3 %v1999_v37 }
 0x1b2   :  { %960 = vmatmul.bf16.gmra.mxu2 %v816_v60  ;;  %v1140_v39 = vpack.c.bf16 %v1077_v59, %v1076_v26  ;;  %v356_v26 = vadd.f32 %v2247_v6, %v2420_v16  ;;  %v358_v60 = vadd.f32 %v2247_v6, %v2432_v25  ;;  %v1998_v25 = vld [vmem:[%s3077_s9 + $0x20] sm:$0xff] }
 0x1b3   :  { %v633_v61 = vpop.f32.mrf.mxu1 }
 0x1b4   :  { %1248 = vmatmul.bf16.vlgmr.msrb.gmra.mxu3 %v1140_v39  ;;  %v634_v1 = vadd.f32 %v2382_v43, %v633_v61 }
 0x1b5   :  { %v921_v20 = vpop.f32.mrf.mxu2  ;;  %1576 = vmatpush.bf16.msrb.mxu0 %v1998_v25  ;;  %2008 = vmatpush.bf16.msra.mxu3 %v1998_v25 }
 0x1b6   :  { %672 = vmatmul.bf16.gmra.mxu1 %v492_v62  ;;  %v922_v8 = vadd.f32 %v2508_v11, %v921_v20  ;;  %v763_v10 = vmax.f32 %v634_v1, 0.0 }
 0x1b8   :  { %v1078_v18 = vmax.f32 %v922_v8, 0.0  ;;  %v453_v8 = vmax.f32 %v358_v60, 0.0  ;;  %v2562_v15 = vpop.f32.mrf.mxu3 }
 0x1b9   :  { %1577 = vmatpush.bf16.msrb.mxu0 %v1997_v45  ;;  %2009 = vmatpush.bf16.msra.mxu3 %v1997_v45 }
 0x1bb   :  { %v635_v5 = vpop.f32.mrf.mxu1 }
 0x1bc   :  { %v636_v9 = vadd.f32 %v2382_v43, %v635_v5  ;;  %v452_v5 = vmax.f32 %v356_v26, 0.0 }
 0x1bd   :  { %v923_v38 = vpop.f32.mrf.mxu2 }
 0x1be   :  { %v764_v49 = vmax.f32 %v636_v9, 0.0  ;;  %v924_v13 = vadd.f32 %v2508_v11, %v923_v38 }
 0x1c0   :  { %v1079_v19 = vmax.f32 %v924_v13, 0.0  ;;  %v817_v22 = vpack.c.bf16 %v764_v49, %v763_v10  ;;  %v495_v13 = vpack.c.bf16 %v453_v8, %v452_v5  ;;  %v1996_v5 = vld [vmem:[%s3077_s9 + $0x10] sm:$0xff] }
 0x1c1   :  { %1578 = vmatpush.bf16.msrb.mxu0 %v1996_v5  ;;  %2010 = vmatpush.bf16.msra.mxu3 %v1996_v5 }
 0x1c2   :  { %965 = vmatmul.bf16.gmra.mxu2 %v817_v22  ;;  %v1141_v53 = vpack.c.bf16 %v1079_v19, %v1078_v18  ;;  %v361_v19 = vadd.f32 %v2247_v6, %v2441_v33 }
 0x1c3   :  { %v638_v24 = vpop.f32.mrf.mxu1 }
 0x1c4   :  { %1253 = vmatmul.bf16.gmra.mxu3 %v1141_v53  ;;  %v639_v4 = vadd.f32 %v2382_v43, %v638_v24 }
 0x1c5   :  { %v926_v28 = vpop.f32.mrf.mxu2 }
 0x1c6   :  { %677 = vmatmul.bf16.gmra.mxu1 %v493_v27  ;;  %v927_v36 = vadd.f32 %v2508_v11, %v926_v28  ;;  %v765_v21 = vmax.f32 %v639_v4, 0.0 }
 0x1c8   :  { %v1080_v50 = vmax.f32 %v927_v36, 0.0 }
 0x1cb   :  { %v640_v31 = vpop.f32.mrf.mxu1 }
 0x1cc   :  { %v641_v40 = vadd.f32 %v2382_v43, %v640_v31  ;;  %v454_v31 = vmax.f32 %v361_v19, 0.0 }
 0x1cd   :  { %v928_v41 = vpop.f32.mrf.mxu2 }
 0x1ce   :  { %v766_v42 = vmax.f32 %v641_v40, 0.0  ;;  %v929_v44 = vadd.f32 %v2508_v11, %v928_v41  ;;  %v496_v47 = vpack.c.bf16 %v455_v35, %v454_v31  ;;  %v1995_v31 = vld [vmem:[%s3077_s9 + $0x8] sm:$0xff]  ;;  %v376_v35 = vadd.f32 %v2247_v6, %v2497_v56 }
 0x1cf   :  { %1579 = vmatpush.bf16.msrb.mxu0 %v1995_v31  ;;  %2011 = vmatpush.bf16.msra.mxu3 %v1995_v31 }
 0x1d0   :  { %v1081_v51 = vmax.f32 %v929_v44, 0.0  ;;  %v818_v63 = vpack.c.bf16 %v766_v42, %v765_v21  ;;  %v2572_v42 = vpop.f32.mrf.mxu3 }
 0x1d2   :  { %970 = vmatmul.bf16.gmra.mxu2 %v818_v63  ;;  %v1142_v2 = vpack.c.bf16 %v1081_v51, %v1080_v50  ;;  %v366_v50 = vadd.f32 %v2247_v6, %v2465_v58  ;;  %v368_v63 = vadd.f32 %v2247_v6, %v2472_v0 }
 0x1d3   :  { %v643_v52 = vpop.f32.mrf.mxu1 }
 0x1d4   :  { %1258 = vmatmul.bf16.gmra.mxu3 %v1142_v2  ;;  %v644_v30 = vadd.f32 %v2382_v43, %v643_v52  ;;  %v457_v60 = vmax.f32 %v368_v63, 0.0 }
 0x1d5   :  { %v931_v55 = vpop.f32.mrf.mxu2 }
 0x1d6   :  { %682 = vmatmul.bf16.gmra.mxu1 %v494_v54  ;;  %v932_v39 = vadd.f32 %v2508_v11, %v931_v55  ;;  %v767_v20 = vmax.f32 %v644_v30, 0.0 }
 0x1d8   :  { %v1082_v9 = vmax.f32 %v932_v39, 0.0  ;;  %v2584_v54 = vpop.f32.mrf.mxu3 }
 0x1db   :  { %v645_v59 = vpop.f32.mrf.mxu1 }
 0x1dc   :  { %v646_v61 = vadd.f32 %v2382_v43, %v645_v59  ;;  %v456_v59 = vmax.f32 %v366_v50, 0.0 }
 0x1dd   :  { %v933_v62 = vpop.f32.mrf.mxu2 }
 0x1de   :  { %v768_v1 = vmax.f32 %v646_v61, 0.0  ;;  %v934_v3 = vadd.f32 %v2508_v11, %v933_v62  ;;  %v497_v0 = vpack.c.bf16 %v457_v60, %v456_v59 }
 0x1e0   :  { %v1083_v38 = vmax.f32 %v934_v3, 0.0  ;;  %v819_v16 = vpack.c.bf16 %v768_v1, %v767_v20  ;;  %v2587_v3 = vpop.f32.mrf.mxu3 }
 0x1e2   :  { %975 = vmatmul.bf16.gmra.mxu2 %v819_v16  ;;  %v1143_v10 = vpack.c.bf16 %v1083_v38, %v1082_v9  ;;  %v371_v9 = vadd.f32 %v2247_v6, %v2487_v12  ;;  %v373_v16 = vadd.f32 %v2247_v6, %v2493_v17 }
 0x1e3   :  { %v648_v49 = vpop.f32.mrf.mxu1 }
 0x1e4   :  { %1263 = vmatmul.bf16.gmra.mxu3 %v1143_v10  ;;  %v649_v18 = vadd.f32 %v2382_v43, %v648_v49  ;;  %v458_v19 = vmax.f32 %v371_v9, 0.0 }
 0x1e5   :  { %v936_v14 = vpop.f32.mrf.mxu2 }
 0x1e6   :  { %687 = vmatmul.bf16.gmra.mxu1 %v495_v13  ;;  %v937_v53 = vadd.f32 %v2508_v11, %v936_v14  ;;  %v769_v28 = vmax.f32 %v649_v18, 0.0 }
 0x1e8   :  { %v1084_v36 = vmax.f32 %v937_v53, 0.0 }
 0x1eb   :  { %v650_v22 = vpop.f32.mrf.mxu1 }
 0x1ec   :  { %v651_v24 = vadd.f32 %v2382_v43, %v650_v22  ;;  %v459_v22 = vmax.f32 %v373_v16, 0.0 }
 0x1ed   :  { %v938_v27 = vpop.f32.mrf.mxu2 }
 0x1ee   :  { %v770_v4 = vmax.f32 %v651_v24, 0.0  ;;  %v939_v29 = vadd.f32 %v2508_v11, %v938_v27  ;;  %v2600_v27 = vpop.f32.mrf.mxu3  ;;  %v498_v17 = vpack.c.bf16 %v459_v22, %v458_v19  ;;  %v2639_v19 = vld [vmem:[%s3078_s8] ss:$0 sm:$0xff] }
 0x1f0   :  { %v1085_v40 = vmax.f32 %v939_v29, 0.0  ;;  %v820_v41 = vpack.c.bf16 %v770_v4, %v769_v28 }
 0x1f2   :  { %980 = vmatmul.bf16.gmra.mxu2 %v820_v41  ;;  %v1144_v33 = vpack.c.bf16 %v1085_v40, %v1084_v36  ;;  %v2613_v41 = vld [vmem:[%s3072_s2] ss:$0 sm:$0xff] }
 0x1f3   :  { %v653_v21 = vpop.f32.mrf.mxu1  ;;  %v381_v60 = vadd.f32 %v2613_v41, %v2532_v23  ;;  %v386_v22 = vadd.f32 %v2613_v41, %v2547_v57 }
 0x1f4   :  { %1268 = vmatmul.bf16.gmra.mxu3 %v1144_v33  ;;  %v654_v48 = vadd.f32 %v2382_v43, %v653_v21  ;;  %v378_v33 = vadd.f32 %v2613_v41, %v2502_v32  ;;  %v1994_v32 = vld [vmem:[%s3077_s9] sm:$0xff] }
 0x1f5   :  { %v941_v44 = vpop.f32.mrf.mxu2  ;;  %1580 = vmatpush.bf16.msrb.mxu0 %v1994_v32  ;;  %2012 = vmatpush.bf16.msra.mxu3 %v1994_v32  ;;  %v391_v32 = vadd.f32 %v2613_v41, %v2562_v15 }
 0x1f6   :  { %692 = vmatmul.bf16.gmra.mxu1 %v496_v47  ;;  %v942_v37 = vadd.f32 %v2508_v11, %v941_v44  ;;  %v771_v55 = vmax.f32 %v654_v48, 0.0  ;;  %v2608_v36 = vpop.f32.mrf.mxu3  ;;  %v460_v48 = vmax.f32 %v376_v35, 0.0  ;;  %v461_v50 = vmax.f32 %v378_v33, 0.0 }
 0x1f7   :  { %v464_v35 = vmax.f32 %v386_v22, 0.0 }
 0x1f8   :  { %v1086_v39 = vmax.f32 %v942_v37, 0.0 }
 0x1fb   :  { %v655_v51 = vpop.f32.mrf.mxu1 }
 0x1fc   :  { %v656_v2 = vadd.f32 %v2382_v43, %v655_v51 }
 0x1fd   :  { %v943_v52 = vpop.f32.mrf.mxu2 }
 0x1fe   :  { %v772_v30 = vmax.f32 %v656_v2, 0.0  ;;  %v944_v26 = vadd.f32 %v2508_v11, %v943_v52 }
 0x200   :  { %v1087_v61 = vmax.f32 %v944_v26, 0.0  ;;  %v821_v58 = vpack.c.bf16 %v772_v30, %v771_v55  ;;  %v499_v55 = vpack.c.bf16 %v461_v50, %v460_v48  ;;  %v2623_v30 = vpop.f32.mrf.mxu3 }
 0x202   :  { %985 = vmatmul.bf16.gmra.mxu2 %v821_v58  ;;  %v1145_v62 = vpack.c.bf16 %v1087_v61, %v1086_v39  ;;  %v383_v61 = vadd.f32 %v2613_v41, %v2537_v34 }
 0x203   :  { %v658_v20 = vpop.f32.mrf.mxu1 }
 0x204   :  { %1273 = vmatmul.bf16.gmra.mxu3 %v1145_v62  ;;  %v659_v8 = vadd.f32 %v2382_v43, %v658_v20 }
 0x205   :  { %v946_v1 = vpop.f32.mrf.mxu2 }
 0x206   :  { %697 = vmatmul.bf16.gmra.mxu1 %v497_v0  ;;  %v947_v10 = vadd.f32 %v2508_v11, %v946_v1  ;;  %v773_v13 = vmax.f32 %v659_v8, 0.0  ;;  %v462_v8 = vmax.f32 %v381_v60, 0.0 }
 0x208   :  { %v1088_v46 = vmax.f32 %v947_v10, 0.0  ;;  %v2633_v9 = vpop.f32.mrf.mxu3 }
 0x20b   :  { %v660_v38 = vpop.f32.mrf.mxu1 }
 0x20c   :  { %v661_v25 = vadd.f32 %v2382_v43, %v660_v38  ;;  %v463_v38 = vmax.f32 %v383_v61, 0.0 }
 0x20d   :  { %v948_v49 = vpop.f32.mrf.mxu2 }
 0x20e   :  { %v774_v14 = vmax.f32 %v661_v25, 0.0  ;;  %v949_v18 = vadd.f32 %v2508_v11, %v948_v49  ;;  %v500_v34 = vpack.c.bf16 %v463_v38, %v462_v8 }
 0x210   :  { %v1089_v53 = vmax.f32 %v949_v18, 0.0  ;;  %v822_v24 = vpack.c.bf16 %v774_v14, %v773_v13 }
 0x212   :  { %990 = vmatmul.bf16.gmra.mxu2 %v822_v24  ;;  %v1146_v12 = vpack.c.bf16 %v1089_v53, %v1088_v46  ;;  %v388_v46 = vadd.f32 %v2613_v41, %v2557_v7 }
 0x213   :  { %v663_v28 = vpop.f32.mrf.mxu1 }
 0x214   :  { %1278 = vmatmul.bf16.gmra.mxu3 %v1146_v12  ;;  %v664_v29 = vadd.f32 %v2382_v43, %v663_v28 }
 0x215   :  { %v951_v4 = vpop.f32.mrf.mxu2 }
 0x216   :  { %702 = vmatmul.bf16.gmra.mxu1 %v498_v17  ;;  %v952_v21 = vadd.f32 %v2508_v11, %v951_v4  ;;  %v775_v45 = vmax.f32 %v664_v29, 0.0 }
 0x218   :  { %v1090_v51 = vmax.f32 %v952_v21, 0.0 }
 0x21b   :  { %v665_v40 = vpop.f32.mrf.mxu1 }
 0x21c   :  { %v666_v47 = vadd.f32 %v2382_v43, %v665_v40  ;;  %v465_v40 = vmax.f32 %v388_v46, 0.0 }
 0x21d   :  { %v953_v44 = vpop.f32.mrf.mxu2 }
 0x21e   :  { %v776_v6 = vmax.f32 %v666_v47, 0.0  ;;  %v954_v56 = vadd.f32 %v2508_v11, %v953_v44  ;;  %v501_v48 = vpack.c.bf16 %v465_v40, %v464_v35 }
 0x220   :  { %v1091_v63 = vmax.f32 %v954_v56, 0.0  ;;  %v823_v37 = vpack.c.bf16 %v776_v6, %v775_v45 }
 0x222   :  { %995 = vmatmul.bf16.gmra.mxu2 %v823_v37  ;;  %v1147_v2 = vpack.c.bf16 %v1091_v63, %v1090_v51 }
 0x223   :  { %v668_v52 = vpop.f32.mrf.mxu1 }
 0x224   :  { %1283 = vmatmul.bf16.gmra.mxu3 %v1147_v2  ;;  %v669_v59 = vadd.f32 %v2382_v43, %v668_v52  ;;  %v393_v2 = vadd.f32 %v2613_v41, %v2572_v42 }
 0x225   :  { %v956_v26 = vpop.f32.mrf.mxu2 }
 0x226   :  { %707 = vmatmul.bf16.gmra.mxu1 %v499_v55  ;;  %v957_v58 = vadd.f32 %v2508_v11, %v956_v26  ;;  %v777_v0 = vmax.f32 %v669_v59, 0.0 }
 0x228   :  { %v1092_v16 = vmax.f32 %v957_v58, 0.0 }
 0x22b   :  { %v670_v39 = vpop.f32.mrf.mxu1 }
 0x22c   :  { %v671_v62 = vadd.f32 %v2382_v43, %v670_v39 }
 0x22d   :  { %v958_v20 = vpop.f32.mrf.mxu2 }
 0x22e   :  { %v778_v1 = vmax.f32 %v671_v62, 0.0  ;;  %v959_v5 = vadd.f32 %v2508_v11, %v958_v20  ;;  %v466_v62 = vmax.f32 %v391_v32, 0.0  ;;  %v467_v20 = vmax.f32 %v393_v2, 0.0 }
 0x230   :  { %v1093_v10 = vmax.f32 %v959_v5, 0.0  ;;  %v824_v23 = vpack.c.bf16 %v778_v1, %v777_v0 }
 0x232   :  { %1000 = vmatmul.bf16.gmra.mxu2 %v824_v23  ;;  %v1148_v25 = vpack.c.bf16 %v1093_v10, %v1092_v16  ;;  %v502_v23 = vpack.c.bf16 %v467_v20, %v466_v62 }
 0x233   :  { %v673_v49 = vpop.f32.mrf.mxu1 }
 0x234   :  { %1288 = vmatmul.bf16.gmra.mxu3 %v1148_v25  ;;  %v674_v18 = vadd.f32 %v2382_v43, %v673_v49 }
 0x235   :  { %v961_v13 = vpop.f32.mrf.mxu2 }
 0x236   :  { %712 = vmatmul.bf16.gmra.mxu1 %v500_v34  ;;  %v962_v24 = vadd.f32 %v2508_v11, %v961_v13  ;;  %v779_v17 = vmax.f32 %v674_v18, 0.0  ;;  %v398_v18 = vadd.f32 %v2613_v41, %v2587_v3 }
 0x237   :  { %v1249_v14 = vpop.f32.mrf.mxu3 }
 0x238   :  { %v1250_v4 = vadd.f32 %v2639_v19, %v1249_v14  ;;  %v1094_v21 = vmax.f32 %v962_v24, 0.0  ;;  %v396_v14 = vadd.f32 %v2613_v41, %v2584_v54 }
 0x23a   :  { %v1409_v44 = vmax.f32 %v1250_v4, 0.0 }
 0x23b   :  { %v675_v53 = vpop.f32.mrf.mxu1 }
 0x23c   :  { %v676_v12 = vadd.f32 %v2382_v43, %v675_v53 }
 0x23d   :  { %v963_v28 = vpop.f32.mrf.mxu2 }
 0x23e   :  { %v780_v29 = vmax.f32 %v676_v12, 0.0  ;;  %v964_v31 = vadd.f32 %v2508_v11, %v963_v28 }
 0x23f   :  { %v1251_v33 = vpop.f32.mrf.mxu3 }
 0x240   :  { %v1095_v57 = vmax.f32 %v964_v31, 0.0  ;;  %v1252_v47 = vadd.f32 %v2639_v19, %v1251_v33  ;;  %v825_v7 = vpack.c.bf16 %v780_v29, %v779_v17  ;;  %v468_v29 = vmax.f32 %v396_v14, 0.0 }
 0x241   :  { %v469_v31 = vmax.f32 %v398_v18, 0.0 }
 0x242   :  { %v1410_v45 = vmax.f32 %v1252_v47, 0.0  ;;  %1005 = vmatmul.bf16.gmra.mxu2 %v825_v7  ;;  %v1149_v6 = vpack.c.bf16 %v1095_v57, %v1094_v21 }
 0x243   :  { %v678_v56 = vpop.f32.mrf.mxu1 }
 0x244   :  { %1293 = vmatmul.bf16.gmra.mxu3 %v1149_v6  ;;  %v1473_v50 = vpack.c.bf16 %v1410_v45, %v1409_v44  ;;  %v679_v37 = vadd.f32 %v2382_v43, %v678_v56  ;;  %v503_v44 = vpack.c.bf16 %v469_v31, %v468_v29 }
 0x245   :  { %v966_v51 = vpop.f32.mrf.mxu2 }
 0x246   :  { %717 = vmatmul.bf16.gmra.mxu1 %v501_v48  ;;  %1581 = vmatmul.bf16.vlgmr.msrb.gmra.mxu0 %v1473_v50  ;;  %v967_v55 = vadd.f32 %v2508_v11, %v966_v51  ;;  %v781_v60 = vmax.f32 %v679_v37, 0.0  ;;  %v401_v50 = vadd.f32 %v2613_v41, %v2600_v27  ;;  %v403_v51 = vadd.f32 %v2613_v41, %v2608_v36 }
 0x247   :  { %v1254_v63 = vpop.f32.mrf.mxu3 }
 0x248   :  { %v1255_v39 = vadd.f32 %v2639_v19, %v1254_v63  ;;  %v1096_v1 = vmax.f32 %v967_v55, 0.0 }
 0x24a   :  { %v1411_v8 = vmax.f32 %v1255_v39, 0.0  ;;  %v471_v39 = vmax.f32 %v403_v51, 0.0 }
 0x24b   :  { %v680_v52 = vpop.f32.mrf.mxu1 }
 0x24c   :  { %v681_v26 = vadd.f32 %v2382_v43, %v680_v52 }
 0x24d   :  { %v968_v59 = vpop.f32.mrf.mxu2 }
 0x24e   :  { %v782_v61 = vmax.f32 %v681_v26, 0.0  ;;  %v969_v58 = vadd.f32 %v2508_v11, %v968_v59 }
 0x24f   :  { %v1256_v0 = vpop.f32.mrf.mxu3 }
 0x250   :  { %v1097_v15 = vmax.f32 %v969_v58, 0.0  ;;  %v1257_v5 = vadd.f32 %v2639_v19, %v1256_v0  ;;  %v826_v42 = vpack.c.bf16 %v782_v61, %v781_v60  ;;  %v470_v60 = vmax.f32 %v401_v50, 0.0 }
 0x252   :  { %v1412_v38 = vmax.f32 %v1257_v5, 0.0  ;;  %1010 = vmatmul.bf16.gmra.mxu2 %v826_v42  ;;  %v1150_v16 = vpack.c.bf16 %v1097_v15, %v1096_v1  ;;  %v504_v5 = vpack.c.bf16 %v471_v39, %v470_v60 }
 0x253   :  { %v683_v10 = vpop.f32.mrf.mxu1 }
 0x254   :  { %1298 = vmatmul.bf16.gmra.mxu3 %v1150_v16  ;;  %v1474_v25 = vpack.c.bf16 %v1412_v38, %v1411_v8  ;;  %v684_v13 = vadd.f32 %v2382_v43, %v683_v10  ;;  %v406_v10 = vadd.f32 %v2613_v41, %v2623_v30 }
 0x255   :  { %v971_v49 = vpop.f32.mrf.mxu2 }
 0x256   :  { %722 = vmatmul.bf16.gmra.mxu1 %v502_v23  ;;  %1586 = vmatmul.bf16.gmra.mxu0 %v1474_v25  ;;  %v972_v46 = vadd.f32 %v2508_v11, %v971_v49  ;;  %v783_v12 = vmax.f32 %v684_v13, 0.0  ;;  %v408_v23 = vadd.f32 %v2613_v41, %v2633_v9 }
 0x257   :  { %v1259_v34 = vpop.f32.mrf.mxu3 }
 0x258   :  { %v1260_v28 = vadd.f32 %v2639_v19, %v1259_v34  ;;  %v1098_v40 = vmax.f32 %v972_v46, 0.0 }
 0x25a   :  { %v1413_v21 = vmax.f32 %v1260_v28, 0.0 }
 0x25b   :  { %v685_v22 = vpop.f32.mrf.mxu1 }
 0x25c   :  { %v686_v53 = vadd.f32 %v2382_v43, %v685_v22 }
 0x25d   :  { %v973_v24 = vpop.f32.mrf.mxu2 }
 0x25e   :  { %v784_v17 = vmax.f32 %v686_v53, 0.0  ;;  %v974_v4 = vadd.f32 %v2508_v11, %v973_v24  ;;  %v472_v53 = vmax.f32 %v406_v10, 0.0  ;;  %v473_v24 = vmax.f32 %v408_v23, 0.0 }
 0x25f   :  { %v1261_v35 = vpop.f32.mrf.mxu3 }
 0x260   :  { %v827_v54 = vpack.c.bf16 %v784_v17, %v783_v12  ;;  %v1099_v33 = vmax.f32 %v974_v4, 0.0  ;;  %v1262_v3 = vadd.f32 %v2639_v19, %v1261_v35  ;;  %v505_v31 = vpack.c.bf16 %v473_v24, %v472_v53 }
 0x262   :  { %v1414_v57 = vmax.f32 %v1262_v3, 0.0  ;;  %1015 = vmatmul.bf16.gmra.mxu2 %v827_v54  ;;  %v1151_v47 = vpack.c.bf16 %v1099_v33, %v1098_v40  ;;  %v2693_v33 = vld [vmem:[%s3074_s4] ss:$0 sm:$0xff] }
 0x263   :  { %v688_v7 = vpop.f32.mrf.mxu1 }
 0x264   :  { %1303 = vmatmul.bf16.gmra.mxu3 %v1151_v47  ;;  %v1475_v45 = vpack.c.bf16 %v1414_v57, %v1413_v21  ;;  %v689_v48 = vadd.f32 %v2382_v43, %v688_v7 }
 0x265   :  { %v976_v6 = vpop.f32.mrf.mxu2 }
 0x266   :  { %727 = vmatmul.bf16.gmra.mxu1 %v503_v44  ;;  %1591 = vmatmul.bf16.gmra.mxu0 %v1475_v45  ;;  %v977_v37 = vadd.f32 %v2508_v11, %v976_v6  ;;  %v785_v52 = vmax.f32 %v689_v48, 0.0 }
 0x267   :  { %v1264_v56 = vpop.f32.mrf.mxu3 }
 0x268   :  { %v1265_v55 = vadd.f32 %v2639_v19, %v1264_v56  ;;  %v1100_v58 = vmax.f32 %v977_v37, 0.0 }
 0x26a   :  { %v1415_v20 = vmax.f32 %v1265_v55, 0.0 }
 0x26b   :  { %v690_v63 = vpop.f32.mrf.mxu1 }
 0x26c   :  { %v691_v32 = vadd.f32 %v2382_v43, %v690_v63 }
 0x26d   :  { %v978_v2 = vpop.f32.mrf.mxu2 }
 0x26e   :  { %v786_v26 = vmax.f32 %v691_v32, 0.0  ;;  %v979_v59 = vadd.f32 %v2508_v11, %v978_v2 }
 0x26f   :  { %v1266_v61 = vpop.f32.mrf.mxu3 }
 0x270   :  { %v828_v27 = vpack.c.bf16 %v786_v26, %v785_v52  ;;  %v1101_v62 = vmax.f32 %v979_v59, 0.0  ;;  %v1267_v36 = vadd.f32 %v2639_v19, %v1266_v61 }
 0x272   :  { %v1416_v0 = vmax.f32 %v1267_v36, 0.0  ;;  %1020 = vmatmul.bf16.gmra.mxu2 %v828_v27  ;;  %v1152_v1 = vpack.c.bf16 %v1101_v62, %v1100_v58 }
 0x273   :  { %v693_v15 = vpop.f32.mrf.mxu1 }
 0x274   :  { %1308 = vmatmul.bf16.gmra.mxu3 %v1152_v1  ;;  %v1476_v42 = vpack.c.bf16 %v1416_v0, %v1415_v20  ;;  %v694_v16 = vadd.f32 %v2382_v43, %v693_v15 }
 0x275   :  { %v981_v8 = vpop.f32.mrf.mxu2 }
 0x276   :  { %732 = vmatmul.bf16.gmra.mxu1 %v504_v5  ;;  %1596 = vmatmul.bf16.gmra.mxu0 %v1476_v42  ;;  %v982_v49 = vadd.f32 %v2508_v11, %v981_v8  ;;  %v787_v14 = vmax.f32 %v694_v16, 0.0 }
 0x277   :  { %v1269_v38 = vpop.f32.mrf.mxu3 }
 0x278   :  { %v1270_v18 = vadd.f32 %v2639_v19, %v1269_v38  ;;  %v1102_v28 = vmax.f32 %v982_v49, 0.0 }
 0x27a   :  { %v1417_v9 = vmax.f32 %v1270_v18, 0.0 }
 0x27b   :  { %v695_v25 = vpop.f32.mrf.mxu1 }
 0x27c   :  { %v696_v34 = vadd.f32 %v2382_v43, %v695_v25 }
 0x27d   :  { %v983_v13 = vpop.f32.mrf.mxu2 }
 0x27e   :  { %v788_v22 = vmax.f32 %v696_v34, 0.0  ;;  %v984_v46 = vadd.f32 %v2508_v11, %v983_v13 }
 0x27f   :  { %v1271_v12 = vpop.f32.mrf.mxu3 }
 0x280   :  { %v829_v30 = vpack.c.bf16 %v788_v22, %v787_v14  ;;  %v1103_v17 = vmax.f32 %v984_v46, 0.0  ;;  %v1272_v41 = vadd.f32 %v2639_v19, %v1271_v12 }
 0x282   :  { %v1418_v4 = vmax.f32 %v1272_v41, 0.0  ;;  %1025 = vmatmul.bf16.gmra.mxu2 %v829_v30  ;;  %v1153_v29 = vpack.c.bf16 %v1103_v17, %v1102_v28 }
 0x283   :  { %v698_v43 = vpop.f32.mrf.mxu1 }
 0x284   :  { %1313 = vmatmul.bf16.gmra.mxu3 %v1153_v29  ;;  %v1477_v35 = vpack.c.bf16 %v1418_v4, %v1417_v9  ;;  %v699_v3 = vadd.f32 %v2693_v33, %v698_v43 }
 0x285   :  { %v986_v40 = vpop.f32.mrf.mxu2 }
 0x286   :  { %737 = vmatmul.bf16.gmra.mxu1 %v505_v31  ;;  %1601 = vmatmul.bf16.gmra.mxu0 %v1477_v35  ;;  %v987_v57 = vadd.f32 %v2508_v11, %v986_v40  ;;  %v789_v44 = vmax.f32 %v699_v3, 0.0 }
 0x287   :  { %v1274_v54 = vpop.f32.mrf.mxu3 }
 0x288   :  { %v1275_v45 = vadd.f32 %v2639_v19, %v1274_v54  ;;  %v1104_v50 = vmax.f32 %v987_v57, 0.0 }
 0x28a   :  { %v1419_v32 = vmax.f32 %v1275_v45, 0.0 }
 0x28b   :  { %v700_v21 = vpop.f32.mrf.mxu1 }
 0x28c   :  { %v701_v47 = vadd.f32 %v2693_v33, %v700_v21 }
 0x28d   :  { %v988_v7 = vpop.f32.mrf.mxu2 }
 0x28e   :  { %v790_v6 = vmax.f32 %v701_v47, 0.0  ;;  %v989_v56 = vadd.f32 %v2508_v11, %v988_v7 }
 0x28f   :  { %v1276_v48 = vpop.f32.mrf.mxu3 }
 0x290   :  { %v830_v51 = vpack.c.bf16 %v790_v6, %v789_v44  ;;  %v1105_v63 = vmax.f32 %v989_v56, 0.0  ;;  %v1277_v37 = vadd.f32 %v2639_v19, %v1276_v48 }
 0x292   :  { %v1420_v2 = vmax.f32 %v1277_v37, 0.0  ;;  %1030 = vmatmul.bf16.gmra.mxu2 %v830_v51  ;;  %v1154_v52 = vpack.c.bf16 %v1105_v63, %v1104_v50 }
 0x293   :  { %v703_v55 = vpop.f32.mrf.mxu1 }
 0x294   :  { %1318 = vmatmul.bf16.gmra.mxu3 %v1154_v52  ;;  %v1478_v26 = vpack.c.bf16 %v1420_v2, %v1419_v32  ;;  %v704_v39 = vadd.f32 %v2693_v33, %v703_v55  ;;  %v2722_v52 = vld [vmem:[%s3079_s10] ss:$0 sm:$0xff] }
 0x295   :  { %v991_v59 = vpop.f32.mrf.mxu2 }
 0x296   :  { %1606 = vmatmul.bf16.gmra.mxu0 %v1478_v26  ;;  %v992_v58 = vadd.f32 %v2508_v11, %v991_v59  ;;  %v791_v36 = vmax.f32 %v704_v39, 0.0 }
 0x297   :  { %v1279_v60 = vpop.f32.mrf.mxu3 }
 0x298   :  { %v1280_v20 = vadd.f32 %v2639_v19, %v1279_v60  ;;  %v1106_v5 = vmax.f32 %v992_v58, 0.0 }
 0x29a   :  { %v1421_v16 = vmax.f32 %v1280_v20, 0.0 }
 0x29b   :  { %v705_v61 = vpop.f32.mrf.mxu1 }
 0x29c   :  { %v706_v27 = vadd.f32 %v2693_v33, %v705_v61 }
 0x29d   :  { %v993_v62 = vpop.f32.mrf.mxu2 }
 0x29e   :  { %v792_v0 = vmax.f32 %v706_v27, 0.0  ;;  %v994_v1 = vadd.f32 %v2508_v11, %v993_v62 }
 0x29f   :  { %v1281_v15 = vpop.f32.mrf.mxu3 }
 0x2a0   :  { %v831_v42 = vpack.c.bf16 %v792_v0, %v791_v36  ;;  %v1107_v8 = vmax.f32 %v994_v1, 0.0  ;;  %v1282_v38 = vadd.f32 %v2639_v19, %v1281_v15 }
 0x2a2   :  { %v1422_v10 = vmax.f32 %v1282_v38, 0.0  ;;  %1035 = vmatmul.bf16.gmra.mxu2 %v831_v42  ;;  %v1155_v23 = vpack.c.bf16 %v1107_v8, %v1106_v5 }
 0x2a3   :  { %v708_v25 = vpop.f32.mrf.mxu1 }
 0x2a4   :  { %1323 = vmatmul.bf16.gmra.mxu3 %v1155_v23  ;;  %v1479_v49 = vpack.c.bf16 %v1422_v10, %v1421_v16  ;;  %v709_v14 = vadd.f32 %v2693_v33, %v708_v25 }
 0x2a5   :  { %v996_v34 = vpop.f32.mrf.mxu2 }
 0x2a6   :  { %1611 = vmatmul.bf16.gmra.mxu0 %v1479_v49  ;;  %v997_v22 = vadd.f32 %v2508_v11, %v996_v34  ;;  %v793_v24 = vmax.f32 %v709_v14, 0.0 }
 0x2a7   :  { %v1284_v13 = vpop.f32.mrf.mxu3 }
 0x2a8   :  { %v1285_v12 = vadd.f32 %v2639_v19, %v1284_v13  ;;  %v1108_v41 = vmax.f32 %v997_v22, 0.0 }
 0x2aa   :  { %v1423_v43 = vmax.f32 %v1285_v12, 0.0 }
 0x2ab   :  { %v710_v18 = vpop.f32.mrf.mxu1 }
 0x2ac   :  { %v711_v46 = vadd.f32 %v2693_v33, %v710_v18 }
 0x2ad   :  { %v998_v53 = vpop.f32.mrf.mxu2 }
 0x2ae   :  { %v794_v28 = vmax.f32 %v711_v46, 0.0  ;;  %v999_v30 = vadd.f32 %v2508_v11, %v998_v53 }
 0x2af   :  { %v1286_v17 = vpop.f32.mrf.mxu3 }
 0x2b0   :  { %v832_v9 = vpack.c.bf16 %v794_v28, %v793_v24  ;;  %v1109_v4 = vmax.f32 %v999_v30, 0.0  ;;  %v1287_v29 = vadd.f32 %v2639_v19, %v1286_v17 }
 0x2b2   :  { %v1424_v31 = vmax.f32 %v1287_v29, 0.0  ;;  %1040 = vmatmul.bf16.gmra.mxu2 %v832_v9  ;;  %v1156_v35 = vpack.c.bf16 %v1109_v4, %v1108_v41  ;;  %v2746_v9 = vld [vmem:[%s3075_s6] ss:$0 sm:$0xff] }
 0x2b3   :  { %v713_v40 = vpop.f32.mrf.mxu1 }
 0x2b4   :  { %1328 = vmatmul.bf16.gmra.mxu3 %v1156_v35  ;;  %v1480_v54 = vpack.c.bf16 %v1424_v31, %v1423_v43  ;;  %v714_v57 = vadd.f32 %v2693_v33, %v713_v40 }
 0x2b5   :  { %v1001_v3 = vpop.f32.mrf.mxu2 }
 0x2b6   :  { %1616 = vmatmul.bf16.gmra.mxu0 %v1480_v54  ;;  %v1002_v7 = vadd.f32 %v2508_v11, %v1001_v3  ;;  %v795_v6 = vmax.f32 %v714_v57, 0.0 }
 0x2b7   :  { %v1289_v21 = vpop.f32.mrf.mxu3 }
 0x2b8   :  { %v1290_v56 = vadd.f32 %v2639_v19, %v1289_v21  ;;  %v1110_v63 = vmax.f32 %v1002_v7, 0.0 }
 0x2ba   :  { %v1425_v55 = vmax.f32 %v1290_v56, 0.0 }
 0x2bb   :  { %v715_v47 = vpop.f32.mrf.mxu1 }
 0x2bc   :  { %v716_v44 = vadd.f32 %v2693_v33, %v715_v47 }
 0x2bd   :  { %v1003_v45 = vpop.f32.mrf.mxu2 }
 0x2be   :  { %v796_v48 = vmax.f32 %v716_v44, 0.0  ;;  %v1004_v50 = vadd.f32 %v2508_v11, %v1003_v45 }
 0x2bf   :  { %v1291_v51 = vpop.f32.mrf.mxu3 }
 0x2c0   :  { %v833_v37 = vpack.c.bf16 %v796_v48, %v795_v6  ;;  %v1111_v32 = vmax.f32 %v1004_v50, 0.0  ;;  %v1292_v2 = vadd.f32 %v2639_v19, %v1291_v51 }
 0x2c2   :  { %v1426_v26 = vmax.f32 %v1292_v2, 0.0  ;;  %1045 = vmatmul.bf16.gmra.mxu2 %v833_v37  ;;  %v1157_v59 = vpack.c.bf16 %v1111_v32, %v1110_v63 }
 0x2c3   :  { %v718_v60 = vpop.f32.mrf.mxu1  ;;  %v1582_v39 = vpop.f32.mrf.mxu0 }
 0x2c4   :  { %v1583_v61 = vadd.f32 %v2722_v52, %v1582_v39  ;;  %1333 = vmatmul.bf16.gmra.mxu3 %v1157_v59  ;;  %v1481_v58 = vpack.c.bf16 %v1426_v26, %v1425_v55  ;;  %v719_v36 = vadd.f32 %v2693_v33, %v718_v60 }
 0x2c5   :  { %v1006_v27 = vpop.f32.mrf.mxu2 }
 0x2c6   :  { %1742 = vst [vmem:[%s3080_s11] sm:$0xff] %v1583_v61  ;;  %1621 = vmatmul.bf16.gmra.mxu0 %v1481_v58  ;;  %v1007_v1 = vadd.f32 %v2508_v11, %v1006_v27  ;;  %v797_v8 = vmax.f32 %v719_v36, 0.0 }
 0x2c7   :  { %v1294_v62 = vpop.f32.mrf.mxu3 }
 0x2c8   :  { %v1295_v38 = vadd.f32 %v2639_v19, %v1294_v62  ;;  %v1112_v25 = vmax.f32 %v1007_v1, 0.0 }
 0x2ca   :  { %v1427_v14 = vmax.f32 %v1295_v38, 0.0 }
 0x2cb   :  { %v720_v20 = vpop.f32.mrf.mxu1  ;;  %v1584_v0 = vpop.f32.mrf.mxu0 }
 0x2cc   :  { %v721_v15 = vadd.f32 %v2693_v33, %v720_v20  ;;  %v1585_v5 = vadd.f32 %v2722_v52, %v1584_v0 }
 0x2cd   :  { %v1008_v42 = vpop.f32.mrf.mxu2 }
 0x2ce   :  { %v798_v16 = vmax.f32 %v721_v15, 0.0  ;;  %1743 = vst [vmem:[%s3080_s11 + $0x8] sm:$0xff] %v1585_v5  ;;  %v1009_v10 = vadd.f32 %v2508_v11, %v1008_v42 }
 0x2cf   :  { %v1296_v23 = vpop.f32.mrf.mxu3 }
 0x2d0   :  { %v834_v49 = vpack.c.bf16 %v798_v16, %v797_v8  ;;  %v1113_v34 = vmax.f32 %v1009_v10, 0.0  ;;  %v1297_v13 = vadd.f32 %v2639_v19, %v1296_v23 }
 0x2d2   :  { %v1428_v18 = vmax.f32 %v1297_v13, 0.0  ;;  %1050 = vmatmul.bf16.gmra.mxu2 %v834_v49  ;;  %v1158_v22 = vpack.c.bf16 %v1113_v34, %v1112_v25 }
 0x2d3   :  { %v723_v46 = vpop.f32.mrf.mxu1  ;;  %v1587_v53 = vpop.f32.mrf.mxu0 }
 0x2d4   :  { %v1588_v24 = vadd.f32 %v2722_v52, %v1587_v53  ;;  %1338 = vmatmul.bf16.gmra.mxu3 %v1158_v22  ;;  %v1482_v12 = vpack.c.bf16 %v1428_v18, %v1427_v14  ;;  %v724_v30 = vadd.f32 %v2693_v33, %v723_v46 }
 0x2d5   :  { %v1011_v28 = vpop.f32.mrf.mxu2 }
 0x2d6   :  { %1744 = vst [vmem:[%s3080_s11 + $0x10] sm:$0xff] %v1588_v24  ;;  %1626 = vmatmul.bf16.gmra.mxu0 %v1482_v12  ;;  %v1012_v4 = vadd.f32 %v2746_v9, %v1011_v28  ;;  %v799_v35 = vmax.f32 %v724_v30, 0.0 }
 0x2d7   :  { %v1299_v11 = vpop.f32.mrf.mxu3 }
 0x2d8   :  { %v1300_v40 = vadd.f32 %v2639_v19, %v1299_v11  ;;  %v1114_v57 = vmax.f32 %v1012_v4, 0.0 }
 0x2da   :  { %v1429_v45 = vmax.f32 %v1300_v40, 0.0 }
 0x2db   :  { %v725_v17 = vpop.f32.mrf.mxu1  ;;  %v1589_v41 = vpop.f32.mrf.mxu0 }
 0x2dc   :  { %v726_v29 = vadd.f32 %v2693_v33, %v725_v17  ;;  %v1590_v43 = vadd.f32 %v2722_v52, %v1589_v41 }
 0x2dd   :  { %v1013_v31 = vpop.f32.mrf.mxu2 }
 0x2de   :  { %v800_v54 = vmax.f32 %v726_v29, 0.0  ;;  %1745 = vst [vmem:[%s3080_s11 + $0x18] sm:$0xff] %v1590_v43  ;;  %v1014_v3 = vadd.f32 %v2746_v9, %v1013_v31 }
 0x2df   :  { %v1301_v21 = vpop.f32.mrf.mxu3 }
 0x2e0   :  { %v835_v47 = vpack.c.bf16 %v800_v54, %v799_v35  ;;  %v1115_v7 = vmax.f32 %v1014_v3, 0.0  ;;  %v1302_v44 = vadd.f32 %v2639_v19, %v1301_v21 }
 0x2e2   :  { %v1430_v6 = vmax.f32 %v1302_v44, 0.0  ;;  %1055 = vmatmul.bf16.gmra.mxu2 %v835_v47  ;;  %v1159_v56 = vpack.c.bf16 %v1115_v7, %v1114_v57 }
 0x2e3   :  { %v728_v48 = vpop.f32.mrf.mxu1  ;;  %v1592_v50 = vpop.f32.mrf.mxu0 }
 0x2e4   :  { %v1593_v51 = vadd.f32 %v2722_v52, %v1592_v50  ;;  %1343 = vmatmul.bf16.gmra.mxu3 %v1159_v56  ;;  %v1483_v63 = vpack.c.bf16 %v1430_v6, %v1429_v45  ;;  %v729_v2 = vadd.f32 %v2693_v33, %v728_v48 }
 0x2e5   :  { %v1016_v37 = vpop.f32.mrf.mxu2 }
 0x2e6   :  { %1746 = vst [vmem:[%s3080_s11 + $0x20] sm:$0xff] %v1593_v51  ;;  %1631 = vmatmul.bf16.gmra.mxu0 %v1483_v63  ;;  %v1017_v59 = vadd.f32 %v2746_v9, %v1016_v37  ;;  %v801_v58 = vmax.f32 %v729_v2, 0.0 }
 0x2e7   :  { %v1304_v32 = vpop.f32.mrf.mxu3 }
 0x2e8   :  { %v1305_v27 = vadd.f32 %v2639_v19, %v1304_v32  ;;  %v1116_v0 = vmax.f32 %v1017_v59, 0.0 }
 0x2ea   :  { %v1431_v42 = vmax.f32 %v1305_v27, 0.0 }
 0x2eb   :  { %v730_v55 = vpop.f32.mrf.mxu1  ;;  %v1594_v26 = vpop.f32.mrf.mxu0 }
 0x2ec   :  { %v731_v60 = vadd.f32 %v2693_v33, %v730_v55  ;;  %v1595_v39 = vadd.f32 %v2722_v52, %v1594_v26 }
 0x2ed   :  { %v1018_v61 = vpop.f32.mrf.mxu2 }
 0x2ee   :  { %v802_v62 = vmax.f32 %v731_v60, 0.0  ;;  %1747 = vst [vmem:[%s3080_s11 + $0x28] sm:$0xff] %v1595_v39  ;;  %v1019_v36 = vadd.f32 %v2746_v9, %v1018_v61 }
 0x2ef   :  { %v1306_v20 = vpop.f32.mrf.mxu3 }
 0x2f0   :  { %v836_v1 = vpack.c.bf16 %v802_v62, %v801_v58  ;;  %v1117_v15 = vmax.f32 %v1019_v36, 0.0  ;;  %v1307_v5 = vadd.f32 %v2639_v19, %v1306_v20 }
 0x2f2   :  { %v1160_v8 = vpack.c.bf16 %v1117_v15, %v1116_v0  ;;  %v1432_v38 = vmax.f32 %v1307_v5, 0.0  ;;  %1060 = vmatmul.bf16.gmra.mxu2 %v836_v1 }
 0x2f3   :  { %v733_v16 = vpop.f32.mrf.mxu1  ;;  %v1597_v10 = vpop.f32.mrf.mxu0 }
 0x2f4   :  { %v1598_v23 = vadd.f32 %v2722_v52, %v1597_v10  ;;  %1348 = vmatmul.bf16.gmra.mxu3 %v1160_v8  ;;  %v1484_v25 = vpack.c.bf16 %v1432_v38, %v1431_v42  ;;  %v734_v13 = vadd.f32 %v2693_v33, %v733_v16 }
 0x2f5   :  { %v1021_v49 = vpop.f32.mrf.mxu2 }
 0x2f6   :  { %1748 = vst [vmem:[%s3080_s11 + $0x30] sm:$0xff] %v1598_v23  ;;  %1636 = vmatmul.bf16.gmra.mxu0 %v1484_v25  ;;  %v1022_v22 = vadd.f32 %v2746_v9, %v1021_v49  ;;  %v803_v12 = vmax.f32 %v734_v13, 0.0 }
 0x2f7   :  { %v1309_v34 = vpop.f32.mrf.mxu3 }
 0x2f8   :  { %v1310_v28 = vadd.f32 %v2639_v19, %v1309_v34  ;;  %v1118_v41 = vmax.f32 %v1022_v22, 0.0 }
 0x2fa   :  { %v1433_v31 = vmax.f32 %v1310_v28, 0.0 }
 0x2fb   :  { %v735_v14 = vpop.f32.mrf.mxu1  ;;  %v1599_v18 = vpop.f32.mrf.mxu0 }
 0x2fc   :  { %v736_v46 = vadd.f32 %v2693_v33, %v735_v14  ;;  %v1600_v53 = vadd.f32 %v2722_v52, %v1599_v18 }
 0x2fd   :  { %v1023_v24 = vpop.f32.mrf.mxu2 }
 0x2fe   :  { %v804_v11 = vmax.f32 %v736_v46, 0.0  ;;  %1749 = vst [vmem:[%s3080_s11 + $0x38] sm:$0xff] %v1600_v53  ;;  %v1024_v30 = vadd.f32 %v2746_v9, %v1023_v24 }
 0x2ff   :  { %v1311_v17 = vpop.f32.mrf.mxu3 }
 0x300   :  { %v837_v4 = vpack.c.bf16 %v804_v11, %v803_v12  ;;  %v1119_v29 = vmax.f32 %v1024_v30, 0.0  ;;  %v1312_v43 = vadd.f32 %v2639_v19, %v1311_v17 }
 0x302   :  { %v1161_v35 = vpack.c.bf16 %v1119_v29, %v1118_v41  ;;  %v1434_v40 = vmax.f32 %v1312_v43, 0.0  ;;  %1065 = vmatmul.bf16.gmra.mxu2 %v837_v4 }
 0x303   :  { %v738_v54 = vpop.f32.mrf.mxu1  ;;  %v1602_v3 = vpop.f32.mrf.mxu0 }
 0x304   :  { %v1603_v21 = vadd.f32 %v2722_v52, %v1602_v3  ;;  %1353 = vmatmul.bf16.gmra.mxu3 %v1161_v35  ;;  %v1485_v57 = vpack.c.bf16 %v1434_v40, %v1433_v31  ;;  %v739_v44 = vadd.f32 %v2693_v33, %v738_v54 }
 0x305   :  { %v1026_v47 = vpop.f32.mrf.mxu2 }
 0x306   :  { %1750 = vst [vmem:[%s3080_s11 + $0x40] sm:$0xff] %v1603_v21  ;;  %1641 = vmatmul.bf16.gmra.mxu0 %v1485_v57  ;;  %v1027_v56 = vadd.f32 %v2746_v9, %v1026_v47  ;;  %v805_v63 = vmax.f32 %v739_v44, 0.0 }
 0x307   :  { %v1314_v7 = vpop.f32.mrf.mxu3 }
 0x308   :  { %v1315_v37 = vadd.f32 %v2639_v19, %v1314_v7  ;;  %v1120_v26 = vmax.f32 %v1027_v56, 0.0 }
 0x30b   :  { %v740_v45 = vpop.f32.mrf.mxu1  ;;  %v1604_v6 = vpop.f32.mrf.mxu0 }
 0x30c   :  { %v741_v48 = vadd.f32 %v2693_v33, %v740_v45  ;;  %v1605_v50 = vadd.f32 %v2722_v52, %v1604_v6  ;;  %v1435_v33 = vmax.f32 %v1315_v37, 0.0 }
 0x30d   :  { %v1028_v51 = vpop.f32.mrf.mxu2 }
 0x30e   :  { %v806_v32 = vmax.f32 %v741_v48, 0.0  ;;  %1751 = vst [vmem:[%s3080_s11 + $0x48] sm:$0xff] %v1605_v50  ;;  %v1029_v2 = vadd.f32 %v2746_v9, %v1028_v51 }
 0x30f   :  { %v1316_v55 = vpop.f32.mrf.mxu3 }
 0x310   :  { %v838_v59 = vpack.c.bf16 %v806_v32, %v805_v63  ;;  %v1121_v60 = vmax.f32 %v1029_v2, 0.0  ;;  %v1317_v39 = vadd.f32 %v2639_v19, %v1316_v55 }
 0x312   :  { %v1162_v61 = vpack.c.bf16 %v1121_v60, %v1120_v26  ;;  %v1436_v58 = vmax.f32 %v1317_v39, 0.0  ;;  %1070 = vmatmul.bf16.gmra.mxu2 %v838_v59 }
 0x313   :  { %v1607_v27 = vpop.f32.mrf.mxu0 }
 0x314   :  { %v1608_v62 = vadd.f32 %v2722_v52, %v1607_v27  ;;  %1358 = vmatmul.bf16.gmra.mxu3 %v1162_v61  ;;  %v1486_v36 = vpack.c.bf16 %v1436_v58, %v1435_v33 }
 0x315   :  { %v1031_v20 = vpop.f32.mrf.mxu2 }
 0x316   :  { %1752 = vst [vmem:[%s3080_s11 + $0x50] sm:$0xff] %v1608_v62  ;;  %1646 = vmatmul.bf16.gmra.mxu0 %v1486_v36  ;;  %v1032_v15 = vadd.f32 %v2746_v9, %v1031_v20 }
 0x317   :  { %v1319_v0 = vpop.f32.mrf.mxu3 }
 0x318   :  { %v1320_v8 = vadd.f32 %v2639_v19, %v1319_v0  ;;  %v1122_v10 = vmax.f32 %v1032_v15, 0.0 }
 0x31a   :  { %v1437_v49 = vmax.f32 %v1320_v8, 0.0 }
 0x31b   :  { %v1609_v1 = vpop.f32.mrf.mxu0 }
 0x31c   :  { %v1610_v5 = vadd.f32 %v2722_v52, %v1609_v1 }
 0x31d   :  { %v1033_v42 = vpop.f32.mrf.mxu2 }
 0x31e   :  { %1753 = vst [vmem:[%s3080_s11 + $0x58] sm:$0xff] %v1610_v5  ;;  %v1034_v38 = vadd.f32 %v2746_v9, %v1033_v42 }
 0x31f   :  { %v1321_v16 = vpop.f32.mrf.mxu3 }
 0x320   :  { %v1123_v23 = vmax.f32 %v1034_v38, 0.0  ;;  %v1322_v25 = vadd.f32 %v2639_v19, %v1321_v16 }
 0x322   :  { %v1163_v34 = vpack.c.bf16 %v1123_v23, %v1122_v10  ;;  %v1438_v13 = vmax.f32 %v1322_v25, 0.0 }
 0x323   :  { %v1612_v14 = vpop.f32.mrf.mxu0 }
 0x324   :  { %v1613_v18 = vadd.f32 %v2722_v52, %v1612_v14  ;;  %1363 = vmatmul.bf16.gmra.mxu3 %v1163_v34  ;;  %v1487_v22 = vpack.c.bf16 %v1438_v13, %v1437_v49 }
 0x325   :  { %v1036_v46 = vpop.f32.mrf.mxu2 }
 0x326   :  { %1754 = vst [vmem:[%s3080_s11 + $0x60] sm:$0xff] %v1613_v18  ;;  %1651 = vmatmul.bf16.gmra.mxu0 %v1487_v22  ;;  %v1037_v12 = vadd.f32 %v2746_v9, %v1036_v46 }
 0x327   :  { %v1324_v53 = vpop.f32.mrf.mxu3 }
 0x328   :  { %v1325_v30 = vadd.f32 %v2639_v19, %v1324_v53  ;;  %v1124_v4 = vmax.f32 %v1037_v12, 0.0 }
 0x32a   :  { %v1439_v31 = vmax.f32 %v1325_v30, 0.0 }
 0x32b   :  { %v1614_v24 = vpop.f32.mrf.mxu0 }
 0x32c   :  { %v1615_v28 = vadd.f32 %v2722_v52, %v1614_v24 }
 0x32d   :  { %v1038_v11 = vpop.f32.mrf.mxu2 }
 0x32e   :  { %1755 = vst [vmem:[%s3080_s11 + $0x68] sm:$0xff] %v1615_v28  ;;  %v1039_v17 = vadd.f32 %v2746_v9, %v1038_v11 }
 0x32f   :  { %v1326_v41 = vpop.f32.mrf.mxu3 }
 0x330   :  { %v1125_v29 = vmax.f32 %v1039_v17, 0.0  ;;  %v1327_v43 = vadd.f32 %v2639_v19, %v1326_v41 }
 0x332   :  { %v1164_v35 = vpack.c.bf16 %v1125_v29, %v1124_v4  ;;  %v1440_v40 = vmax.f32 %v1327_v43, 0.0 }
 0x333   :  { %v1617_v54 = vpop.f32.mrf.mxu0 }
 0x334   :  { %v1618_v3 = vadd.f32 %v2722_v52, %v1617_v54  ;;  %1368 = vmatmul.bf16.gmra.mxu3 %v1164_v35  ;;  %v1488_v21 = vpack.c.bf16 %v1440_v40, %v1439_v31 }
 0x335   :  { %v1041_v57 = vpop.f32.mrf.mxu2 }
 0x336   :  { %1756 = vst [vmem:[%s3080_s11 + $0x70] sm:$0xff] %v1618_v3  ;;  %1656 = vmatmul.bf16.gmra.mxu0 %v1488_v21  ;;  %v1042_v44 = vadd.f32 %v2746_v9, %v1041_v57  ;;  %v2868_v3 = vld [vmem:[%s3078_s8] ss:$0 sm:$0xff] }
 0x337   :  { %v1329_v47 = vpop.f32.mrf.mxu3 }
 0x338   :  { %v1330_v56 = vadd.f32 %v2639_v19, %v1329_v47  ;;  %v1126_v51 = vmax.f32 %v1042_v44, 0.0 }
 0x33a   :  { %v1441_v32 = vmax.f32 %v1330_v56, 0.0 }
 0x33b   :  { %v1619_v7 = vpop.f32.mrf.mxu0 }
 0x33c   :  { %v1620_v45 = vadd.f32 %v2722_v52, %v1619_v7 }
 0x33d   :  { %v1043_v6 = vpop.f32.mrf.mxu2 }
 0x33e   :  { %1757 = vst [vmem:[%s3080_s11 + $0x78] sm:$0xff] %v1620_v45  ;;  %v1044_v48 = vadd.f32 %v2746_v9, %v1043_v6 }
 0x33f   :  { %v1331_v50 = vpop.f32.mrf.mxu3 }
 0x340   :  { %v1127_v63 = vmax.f32 %v1044_v48, 0.0  ;;  %v1332_v37 = vadd.f32 %v2639_v19, %v1331_v50 }
 0x342   :  { %v1165_v2 = vpack.c.bf16 %v1127_v63, %v1126_v51  ;;  %v1442_v55 = vmax.f32 %v1332_v37, 0.0 }
 0x343   :  { %v1622_v26 = vpop.f32.mrf.mxu0 }
 0x344   :  { %v1623_v59 = vadd.f32 %v2722_v52, %v1622_v26  ;;  %1373 = vmatmul.bf16.gmra.mxu3 %v1165_v2  ;;  %v1489_v60 = vpack.c.bf16 %v1442_v55, %v1441_v32 }
 0x345   :  { %v1046_v39 = vpop.f32.mrf.mxu2 }
 0x346   :  { %1758 = vst [vmem:[%s3080_s11 + $0x80] sm:$0xff] %v1623_v59  ;;  %1661 = vmatmul.bf16.gmra.mxu0 %v1489_v60  ;;  %v1047_v58 = vadd.f32 %v2746_v9, %v1046_v39 }
 0x347   :  { %v1334_v33 = vpop.f32.mrf.mxu3 }
 0x348   :  { %v1335_v36 = vadd.f32 %v2639_v19, %v1334_v33  ;;  %v1128_v1 = vmax.f32 %v1047_v58, 0.0 }
 0x34a   :  { %v1443_v42 = vmax.f32 %v1335_v36, 0.0 }
 0x34b   :  { %v1624_v61 = vpop.f32.mrf.mxu0 }
 0x34c   :  { %v1625_v27 = vadd.f32 %v2722_v52, %v1624_v61 }
 0x34d   :  { %v1048_v62 = vpop.f32.mrf.mxu2 }
 0x34e   :  { %1759 = vst [vmem:[%s3080_s11 + $0x88] sm:$0xff] %v1625_v27  ;;  %v1049_v20 = vadd.f32 %v2746_v9, %v1048_v62 }
 0x34f   :  { %v1336_v0 = vpop.f32.mrf.mxu3 }
 0x350   :  { %v1129_v15 = vmax.f32 %v1049_v20, 0.0  ;;  %v1337_v5 = vadd.f32 %v2639_v19, %v1336_v0 }
 0x352   :  { %v1166_v8 = vpack.c.bf16 %v1129_v15, %v1128_v1  ;;  %v1444_v38 = vmax.f32 %v1337_v5, 0.0 }
 0x353   :  { %v1627_v16 = vpop.f32.mrf.mxu0 }
 0x354   :  { %v1628_v10 = vadd.f32 %v2722_v52, %v1627_v16  ;;  %1378 = vmatmul.bf16.gmra.mxu3 %v1166_v8  ;;  %v1490_v23 = vpack.c.bf16 %v1444_v38, %v1443_v42 }
 0x355   :  { %v1051_v25 = vpop.f32.mrf.mxu2 }
 0x356   :  { %1760 = vst [vmem:[%s3080_s11 + $0x90] sm:$0xff] %v1628_v10  ;;  %1666 = vmatmul.bf16.gmra.mxu0 %v1490_v23  ;;  %v1052_v13 = vadd.f32 %v2746_v9, %v1051_v25 }
 0x357   :  { %v1339_v49 = vpop.f32.mrf.mxu3 }
 0x358   :  { %v1340_v22 = vadd.f32 %v2639_v19, %v1339_v49  ;;  %v1130_v24 = vmax.f32 %v1052_v13, 0.0 }
 0x35a   :  { %v1445_v11 = vmax.f32 %v1340_v22, 0.0 }
 0x35b   :  { %v1629_v34 = vpop.f32.mrf.mxu0 }
 0x35c   :  { %v1630_v14 = vadd.f32 %v2722_v52, %v1629_v34 }
 0x35d   :  { %v1053_v18 = vpop.f32.mrf.mxu2 }
 0x35e   :  { %1761 = vst [vmem:[%s3080_s11 + $0x98] sm:$0xff] %v1630_v14  ;;  %v1054_v46 = vadd.f32 %v2746_v9, %v1053_v18 }
 0x35f   :  { %v1341_v53 = vpop.f32.mrf.mxu3 }
 0x360   :  { %v1131_v12 = vmax.f32 %v1054_v46, 0.0  ;;  %v1342_v28 = vadd.f32 %v2639_v19, %v1341_v53 }
 0x362   :  { %v1167_v30 = vpack.c.bf16 %v1131_v12, %v1130_v24  ;;  %v1446_v17 = vmax.f32 %v1342_v28, 0.0 }
 0x363   :  { %v1632_v41 = vpop.f32.mrf.mxu0 }
 0x364   :  { %v1633_v4 = vadd.f32 %v2722_v52, %v1632_v41  ;;  %1383 = vmatmul.bf16.gmra.mxu3 %v1167_v30  ;;  %v1491_v29 = vpack.c.bf16 %v1446_v17, %v1445_v11 }
 0x365   :  { %v1056_v43 = vpop.f32.mrf.mxu2 }
 0x366   :  { %1762 = vst [vmem:[%s3080_s11 + $0xa0] sm:$0xff] %v1633_v4  ;;  %1671 = vmatmul.bf16.gmra.mxu0 %v1491_v29  ;;  %v1057_v40 = vadd.f32 %v2746_v9, %v1056_v43 }
 0x367   :  { %v1344_v31 = vpop.f32.mrf.mxu3 }
 0x368   :  { %v1345_v21 = vadd.f32 %v2868_v3, %v1344_v31  ;;  %v1132_v7 = vmax.f32 %v1057_v40, 0.0 }
 0x36a   :  { %v1447_v6 = vmax.f32 %v1345_v21, 0.0 }
 0x36b   :  { %v1634_v35 = vpop.f32.mrf.mxu0 }
 0x36c   :  { %v1635_v19 = vadd.f32 %v2722_v52, %v1634_v35 }
 0x36d   :  { %v1058_v54 = vpop.f32.mrf.mxu2 }
 0x36e   :  { %1763 = vst [vmem:[%s3080_s11 + $0xa8] sm:$0xff] %v1635_v19  ;;  %v1059_v57 = vadd.f32 %v2746_v9, %v1058_v54 }
 0x36f   :  { %v1346_v47 = vpop.f32.mrf.mxu3 }
 0x370   :  { %v1133_v44 = vmax.f32 %v1059_v57, 0.0  ;;  %v1347_v45 = vadd.f32 %v2868_v3, %v1346_v47 }
 0x372   :  { %v1168_v56 = vpack.c.bf16 %v1133_v44, %v1132_v7  ;;  %v1448_v48 = vmax.f32 %v1347_v45, 0.0 }
 0x373   :  { %v1637_v50 = vpop.f32.mrf.mxu0 }
 0x374   :  { %v1638_v51 = vadd.f32 %v2722_v52, %v1637_v50  ;;  %1388 = vmatmul.bf16.gmra.mxu3 %v1168_v56  ;;  %v1492_v63 = vpack.c.bf16 %v1448_v48, %v1447_v6 }
 0x375   :  { %v1061_v37 = vpop.f32.mrf.mxu2 }
 0x376   :  { %1764 = vst [vmem:[%s3080_s11 + $0xb0] sm:$0xff] %v1638_v51  ;;  %1676 = vmatmul.bf16.gmra.mxu0 %v1492_v63  ;;  %v1062_v55 = vadd.f32 %v2746_v9, %v1061_v37 }
 0x377   :  { %v1349_v32 = vpop.f32.mrf.mxu3 }
 0x378   :  { %v1350_v60 = vadd.f32 %v2868_v3, %v1349_v32  ;;  %v1134_v61 = vmax.f32 %v1062_v55, 0.0 }
 0x37a   :  { %v1449_v62 = vmax.f32 %v1350_v60, 0.0 }
 0x37b   :  { %v1639_v2 = vpop.f32.mrf.mxu0 }
 0x37c   :  { %v1640_v26 = vadd.f32 %v2722_v52, %v1639_v2 }
 0x37d   :  { %v1063_v59 = vpop.f32.mrf.mxu2 }
 0x37e   :  { %1765 = vst [vmem:[%s3080_s11 + $0xb8] sm:$0xff] %v1640_v26  ;;  %v1064_v39 = vadd.f32 %v2746_v9, %v1063_v59 }
 0x37f   :  { %v1351_v33 = vpop.f32.mrf.mxu3 }
 0x380   :  { %v1135_v58 = vmax.f32 %v1064_v39, 0.0  ;;  %v1352_v27 = vadd.f32 %v2868_v3, %v1351_v33 }
 0x382   :  { %v1169_v36 = vpack.c.bf16 %v1135_v58, %v1134_v61  ;;  %v1450_v20 = vmax.f32 %v1352_v27, 0.0 }
 0x383   :  { %v1642_v0 = vpop.f32.mrf.mxu0 }
 0x384   :  { %v1643_v1 = vadd.f32 %v2722_v52, %v1642_v0  ;;  %1393 = vmatmul.bf16.gmra.mxu3 %v1169_v36  ;;  %v1493_v15 = vpack.c.bf16 %v1450_v20, %v1449_v62 }
 0x385   :  { %v1066_v5 = vpop.f32.mrf.mxu2 }
 0x386   :  { %1766 = vst [vmem:[%s3080_s11 + $0xc0] sm:$0xff] %v1643_v1  ;;  %1681 = vmatmul.bf16.gmra.mxu0 %v1493_v15  ;;  %v1067_v38 = vadd.f32 %v2746_v9, %v1066_v5 }
 0x387   :  { %v1354_v42 = vpop.f32.mrf.mxu3 }
 0x388   :  { %v1355_v23 = vadd.f32 %v2868_v3, %v1354_v42  ;;  %v1136_v34 = vmax.f32 %v1067_v38, 0.0 }
 0x38a   :  { %v1451_v18 = vmax.f32 %v1355_v23, 0.0 }
 0x38b   :  { %v1644_v8 = vpop.f32.mrf.mxu0 }
 0x38c   :  { %v1645_v16 = vadd.f32 %v2722_v52, %v1644_v8 }
 0x38d   :  { %v1068_v10 = vpop.f32.mrf.mxu2 }
 0x38e   :  { %1767 = vst [vmem:[%s3080_s11 + $0xc8] sm:$0xff] %v1645_v16  ;;  %v1069_v25 = vadd.f32 %v2746_v9, %v1068_v10 }
 0x38f   :  { %v1356_v49 = vpop.f32.mrf.mxu3 }
 0x390   :  { %v1137_v13 = vmax.f32 %v1069_v25, 0.0  ;;  %v1357_v14 = vadd.f32 %v2868_v3, %v1356_v49 }
 0x392   :  { %v1170_v22 = vpack.c.bf16 %v1137_v13, %v1136_v34  ;;  %v1452_v46 = vmax.f32 %v1357_v14, 0.0 }
 0x393   :  { %v1647_v53 = vpop.f32.mrf.mxu0 }
 0x394   :  { %v1494_v24 = vpack.c.bf16 %v1452_v46, %v1451_v18  ;;  %v1648_v12 = vadd.f32 %v2722_v52, %v1647_v53  ;;  %1398 = vmatmul.bf16.gmra.mxu3 %v1170_v22 }
 0x395   :  { %v1071_v28 = vpop.f32.mrf.mxu2 }
 0x396   :  { %1768 = vst [vmem:[%s3080_s11 + $0xd0] sm:$0xff] %v1648_v12  ;;  %1686 = vmatmul.bf16.gmra.mxu0 %v1494_v24  ;;  %v1072_v17 = vadd.f32 %v2746_v9, %v1071_v28 }
 0x397   :  { %v1359_v11 = vpop.f32.mrf.mxu3 }
 0x398   :  { %v1360_v29 = vadd.f32 %v2868_v3, %v1359_v11  ;;  %v1138_v35 = vmax.f32 %v1072_v17, 0.0 }
 0x39a   :  { %v1453_v54 = vmax.f32 %v1360_v29, 0.0 }
 0x39b   :  { %v1649_v30 = vpop.f32.mrf.mxu0 }
 0x39c   :  { %v1650_v41 = vadd.f32 %v2722_v52, %v1649_v30 }
 0x39d   :  { %v1073_v4 = vpop.f32.mrf.mxu2 }
 0x39e   :  { %1769 = vst [vmem:[%s3080_s11 + $0xd8] sm:$0xff] %v1650_v41  ;;  %v1074_v43 = vadd.f32 %v2746_v9, %v1073_v4 }
 0x39f   :  { %v1361_v31 = vpop.f32.mrf.mxu3 }
 0x3a0   :  { %v1139_v40 = vmax.f32 %v1074_v43, 0.0  ;;  %v1362_v19 = vadd.f32 %v2868_v3, %v1361_v31 }
 0x3a2   :  { %v1171_v21 = vpack.c.bf16 %v1139_v40, %v1138_v35  ;;  %v1454_v57 = vmax.f32 %v1362_v19, 0.0 }
 0x3a3   :  { %v1652_v47 = vpop.f32.mrf.mxu0 }
 0x3a4   :  { %v1495_v7 = vpack.c.bf16 %v1454_v57, %v1453_v54  ;;  %v1653_v44 = vadd.f32 %v2722_v52, %v1652_v47  ;;  %1403 = vmatmul.bf16.gmra.mxu3 %v1171_v21 }
 0x3a6   :  { %1770 = vst [vmem:[%s3080_s11 + $0xe0] sm:$0xff] %v1653_v44  ;;  %1691 = vmatmul.bf16.gmra.mxu0 %v1495_v7 }
 0x3a7   :  { %v1364_v45 = vpop.f32.mrf.mxu3 }
 0x3a8   :  { %v1365_v56 = vadd.f32 %v2868_v3, %v1364_v45 }
 0x3aa   :  { %v1455_v51 = vmax.f32 %v1365_v56, 0.0 }
 0x3ab   :  { %v1654_v9 = vpop.f32.mrf.mxu0 }
 0x3ac   :  { %v1655_v6 = vadd.f32 %v2722_v52, %v1654_v9 }
 0x3ae   :  { %1771 = vst [vmem:[%s3080_s11 + $0xe8] sm:$0xff] %v1655_v6 }
 0x3af   :  { %v1366_v48 = vpop.f32.mrf.mxu3 }
 0x3b0   :  { %v1367_v50 = vadd.f32 %v2868_v3, %v1366_v48 }
 0x3b2   :  { %v1456_v63 = vmax.f32 %v1367_v50, 0.0 }
 0x3b3   :  { %v1657_v37 = vpop.f32.mrf.mxu0 }
 0x3b4   :  { %v1496_v32 = vpack.c.bf16 %v1456_v63, %v1455_v51  ;;  %v1658_v2 = vadd.f32 %v2722_v52, %v1657_v37 }
 0x3b6   :  { %1772 = vst [vmem:[%s3080_s11 + $0xf0] sm:$0xff] %v1658_v2  ;;  %1696 = vmatmul.bf16.gmra.mxu0 %v1496_v32 }
 0x3b7   :  { %v1369_v55 = vpop.f32.mrf.mxu3 }
 0x3b8   :  { %v1370_v60 = vadd.f32 %v2868_v3, %v1369_v55 }
 0x3ba   :  { %v1457_v61 = vmax.f32 %v1370_v60, 0.0 }
 0x3bb   :  { %v1659_v26 = vpop.f32.mrf.mxu0 }
 0x3bc   :  { %v1660_v59 = vadd.f32 %v2722_v52, %v1659_v26 }
 0x3be   :  { %1773 = vst [vmem:[%s3080_s11 + $0xf8] sm:$0xff] %v1660_v59 }
 0x3bf   :  { %v1371_v39 = vpop.f32.mrf.mxu3 }
 0x3c0   :  { %v1372_v33 = vadd.f32 %v2868_v3, %v1371_v39 }
 0x3c2   :  { %v1458_v58 = vmax.f32 %v1372_v33, 0.0 }
 0x3c3   :  { %v1662_v27 = vpop.f32.mrf.mxu0 }
 0x3c4   :  { %v1497_v62 = vpack.c.bf16 %v1458_v58, %v1457_v61  ;;  %v1663_v36 = vadd.f32 %v2722_v52, %v1662_v27 }
 0x3c6   :  { %1774 = vst [vmem:[%s3080_s11 + $0x100] sm:$0xff] %v1663_v36  ;;  %1701 = vmatmul.bf16.gmra.mxu0 %v1497_v62 }
 0x3c7   :  { %v1374_v20 = vpop.f32.mrf.mxu3 }
 0x3c8   :  { %v1375_v15 = vadd.f32 %v2868_v3, %v1374_v20 }
 0x3ca   :  { %v1459_v8 = vmax.f32 %v1375_v15, 0.0 }
 0x3cb   :  { %v1664_v0 = vpop.f32.mrf.mxu0 }
 0x3cc   :  { %v1665_v1 = vadd.f32 %v2722_v52, %v1664_v0 }
 0x3ce   :  { %1775 = vst [vmem:[%s3080_s11 + $0x108] sm:$0xff] %v1665_v1 }
 0x3cf   :  { %v1376_v5 = vpop.f32.mrf.mxu3 }
 0x3d0   :  { %v1377_v42 = vadd.f32 %v2868_v3, %v1376_v5 }
 0x3d2   :  { %v1460_v38 = vmax.f32 %v1377_v42, 0.0 }
 0x3d3   :  { %v1667_v16 = vpop.f32.mrf.mxu0 }
 0x3d4   :  { %v1498_v10 = vpack.c.bf16 %v1460_v38, %v1459_v8  ;;  %v1668_v23 = vadd.f32 %v2722_v52, %v1667_v16 }
 0x3d6   :  { %1776 = vst [vmem:[%s3080_s11 + $0x110] sm:$0xff] %v1668_v23  ;;  %1706 = vmatmul.bf16.gmra.mxu0 %v1498_v10 }
 0x3d7   :  { %v1379_v25 = vpop.f32.mrf.mxu3 }
 0x3d8   :  { %v1380_v13 = vadd.f32 %v2868_v3, %v1379_v25 }
 0x3da   :  { %v1461_v22 = vmax.f32 %v1380_v13, 0.0 }
 0x3db   :  { %v1669_v49 = vpop.f32.mrf.mxu0 }
 0x3dc   :  { %v1670_v34 = vadd.f32 %v2722_v52, %v1669_v49 }
 0x3de   :  { %1777 = vst [vmem:[%s3080_s11 + $0x118] sm:$0xff] %v1670_v34 }
 0x3df   :  { %v1381_v14 = vpop.f32.mrf.mxu3 }
 0x3e0   :  { %v1382_v18 = vadd.f32 %v2868_v3, %v1381_v14 }
 0x3e2   :  { %v1462_v46 = vmax.f32 %v1382_v18, 0.0 }
 0x3e3   :  { %v1672_v53 = vpop.f32.mrf.mxu0 }
 0x3e4   :  { %v1499_v24 = vpack.c.bf16 %v1462_v46, %v1461_v22  ;;  %v1673_v12 = vadd.f32 %v2722_v52, %v1672_v53 }
 0x3e6   :  { %1778 = vst [vmem:[%s3080_s11 + $0x120] sm:$0xff] %v1673_v12  ;;  %1711 = vmatmul.bf16.gmra.mxu0 %v1499_v24 }
 0x3e7   :  { %v1384_v28 = vpop.f32.mrf.mxu3 }
 0x3e8   :  { %v1385_v17 = vadd.f32 %v2868_v3, %v1384_v28 }
 0x3ea   :  { %v1463_v29 = vmax.f32 %v1385_v17, 0.0 }
 0x3eb   :  { %v1674_v11 = vpop.f32.mrf.mxu0 }
 0x3ec   :  { %v1675_v30 = vadd.f32 %v2722_v52, %v1674_v11 }
 0x3ee   :  { %1779 = vst [vmem:[%s3080_s11 + $0x128] sm:$0xff] %v1675_v30 }
 0x3ef   :  { %v1386_v41 = vpop.f32.mrf.mxu3 }
 0x3f0   :  { %v1387_v4 = vadd.f32 %v2868_v3, %v1386_v41 }
 0x3f2   :  { %v1464_v43 = vmax.f32 %v1387_v4, 0.0 }
 0x3f3   :  { %v1677_v31 = vpop.f32.mrf.mxu0 }
 0x3f4   :  { %v1500_v35 = vpack.c.bf16 %v1464_v43, %v1463_v29  ;;  %v1678_v40 = vadd.f32 %v2722_v52, %v1677_v31 }
 0x3f6   :  { %1780 = vst [vmem:[%s3080_s11 + $0x130] sm:$0xff] %v1678_v40  ;;  %1716 = vmatmul.bf16.gmra.mxu0 %v1500_v35 }
 0x3f7   :  { %v1389_v19 = vpop.f32.mrf.mxu3 }
 0x3f8   :  { %v1390_v57 = vadd.f32 %v2868_v3, %v1389_v19  ;;  %v2022_v19 = vld [vmem:[%s3079_s10] ss:$0 sm:$0xff] }
 0x3fa   :  { %v1465_v44 = vmax.f32 %v1390_v57, 0.0 }
 0x3fb   :  { %v1679_v54 = vpop.f32.mrf.mxu0 }
 0x3fc   :  { %v1680_v21 = vadd.f32 %v2722_v52, %v1679_v54 }
 0x3fe   :  { %1781 = vst [vmem:[%s3080_s11 + $0x138] sm:$0xff] %v1680_v21 }
 0x3ff   :  { %v1391_v47 = vpop.f32.mrf.mxu3 }
 0x400   :  { %v1392_v7 = vadd.f32 %v2868_v3, %v1391_v47 }
 0x402   :  { %v1466_v45 = vmax.f32 %v1392_v7, 0.0 }
 0x403   :  { %v1682_v9 = vpop.f32.mrf.mxu0 }
 0x404   :  { %v1501_v6 = vpack.c.bf16 %v1466_v45, %v1465_v44  ;;  %v1683_v56 = vadd.f32 %v2722_v52, %v1682_v9 }
 0x406   :  { %1782 = vst [vmem:[%s3080_s11 + $0x140] sm:$0xff] %v1683_v56  ;;  %1721 = vmatmul.bf16.gmra.mxu0 %v1501_v6 }
 0x407   :  { %v1394_v48 = vpop.f32.mrf.mxu3 }
 0x408   :  { %v1395_v63 = vadd.f32 %v2868_v3, %v1394_v48 }
 0x40a   :  { %v1467_v2 = vmax.f32 %v1395_v63, 0.0 }
 0x40b   :  { %v1684_v50 = vpop.f32.mrf.mxu0 }
 0x40c   :  { %v1685_v51 = vadd.f32 %v2722_v52, %v1684_v50 }
 0x40e   :  { %1783 = vst [vmem:[%s3080_s11 + $0x148] sm:$0xff] %v1685_v51 }
 0x40f   :  { %v1396_v37 = vpop.f32.mrf.mxu3 }
 0x410   :  { %v1397_v32 = vadd.f32 %v2868_v3, %v1396_v37 }
 0x412   :  { %v1468_v55 = vmax.f32 %v1397_v32, 0.0 }
 0x413   :  { %v1687_v26 = vpop.f32.mrf.mxu0 }
 0x414   :  { %v1502_v59 = vpack.c.bf16 %v1468_v55, %v1467_v2  ;;  %v1688_v60 = vadd.f32 %v2722_v52, %v1687_v26 }
 0x416   :  { %1784 = vst [vmem:[%s3080_s11 + $0x150] sm:$0xff] %v1688_v60  ;;  %1726 = vmatmul.bf16.gmra.mxu0 %v1502_v59 }
 0x417   :  { %v1399_v39 = vpop.f32.mrf.mxu3 }
 0x418   :  { %v1400_v58 = vadd.f32 %v2868_v3, %v1399_v39 }
 0x41a   :  { %v1469_v36 = vmax.f32 %v1400_v58, 0.0 }
 0x41b   :  { %v1689_v33 = vpop.f32.mrf.mxu0 }
 0x41c   :  { %v1690_v61 = vadd.f32 %v2722_v52, %v1689_v33 }
 0x41e   :  { %1785 = vst [vmem:[%s3080_s11 + $0x158] sm:$0xff] %v1690_v61 }
 0x41f   :  { %v1401_v27 = vpop.f32.mrf.mxu3 }
 0x420   :  { %v1402_v62 = vadd.f32 %v2868_v3, %v1401_v27 }
 0x422   :  { %v1470_v20 = vmax.f32 %v1402_v62, 0.0 }
 0x423   :  { %v1692_v0 = vpop.f32.mrf.mxu0 }
 0x424   :  { %v1503_v1 = vpack.c.bf16 %v1470_v20, %v1469_v36  ;;  %v1693_v15 = vadd.f32 %v2722_v52, %v1692_v0 }
 0x426   :  { %1786 = vst [vmem:[%s3080_s11 + $0x160] sm:$0xff] %v1693_v15  ;;  %1731 = vmatmul.bf16.gmra.mxu0 %v1503_v1 }
 0x427   :  { %v1404_v5 = vpop.f32.mrf.mxu3 }
 0x428   :  { %v1405_v38 = vadd.f32 %v2868_v3, %v1404_v5 }
 0x42a   :  { %v1471_v23 = vmax.f32 %v1405_v38, 0.0 }
 0x42b   :  { %v1694_v42 = vpop.f32.mrf.mxu0 }
 0x42c   :  { %v1695_v8 = vadd.f32 %v2722_v52, %v1694_v42 }
 0x42e   :  { %1787 = vst [vmem:[%s3080_s11 + $0x168] sm:$0xff] %v1695_v8 }
 0x42f   :  { %v1406_v16 = vpop.f32.mrf.mxu3 }
 0x430   :  { %v1407_v10 = vadd.f32 %v2868_v3, %v1406_v16 }
 0x432   :  { %v1472_v25 = vmax.f32 %v1407_v10, 0.0 }
 0x433   :  { %v1697_v49 = vpop.f32.mrf.mxu0 }
 0x434   :  { %v1504_v34 = vpack.c.bf16 %v1472_v25, %v1471_v23  ;;  %v1698_v13 = vadd.f32 %v2722_v52, %v1697_v49 }
 0x436   :  { %1788 = vst [vmem:[%s3080_s11 + $0x170] sm:$0xff] %v1698_v13  ;;  %1736 = vmatmul.bf16.vlgmr.msra.gmra.mxu3 %v1504_v34 }
 0x43b   :  { %v1699_v14 = vpop.f32.mrf.mxu0 }
 0x43c   :  { %v1700_v18 = vadd.f32 %v2722_v52, %v1699_v14 }
 0x43e   :  { %1789 = vst [vmem:[%s3080_s11 + $0x178] sm:$0xff] %v1700_v18 }
 0x443   :  { %v1702_v22 = vpop.f32.mrf.mxu0 }
 0x444   :  { %v1703_v3 = vadd.f32 %v2722_v52, %v1702_v22 }
 0x446   :  { %1790 = vst [vmem:[%s3080_s11 + $0x180] sm:$0xff] %v1703_v3 }
 0x44b   :  { %v1704_v46 = vpop.f32.mrf.mxu0 }
 0x44c   :  { %v1705_v53 = vadd.f32 %v2722_v52, %v1704_v46 }
 0x44e   :  { %1791 = vst [vmem:[%s3080_s11 + $0x188] sm:$0xff] %v1705_v53 }
 0x453   :  { %v1707_v24 = vpop.f32.mrf.mxu0 }
 0x454   :  { %v1708_v12 = vadd.f32 %v2722_v52, %v1707_v24 }
 0x456   :  { %1792 = vst [vmem:[%s3080_s11 + $0x190] sm:$0xff] %v1708_v12 }
 0x45b   :  { %v1709_v28 = vpop.f32.mrf.mxu0 }
 0x45c   :  { %v1710_v11 = vadd.f32 %v2722_v52, %v1709_v28 }
 0x45e   :  { %1793 = vst [vmem:[%s3080_s11 + $0x198] sm:$0xff] %v1710_v11 }
 0x463   :  { %v1712_v30 = vpop.f32.mrf.mxu0 }
 0x464   :  { %v1713_v17 = vadd.f32 %v2722_v52, %v1712_v30 }
 0x466   :  { %1794 = vst [vmem:[%s3080_s11 + $0x1a0] sm:$0xff] %v1713_v17 }
 0x46b   :  { %v1714_v41 = vpop.f32.mrf.mxu0 }
 0x46c   :  { %v1715_v4 = vadd.f32 %v2722_v52, %v1714_v41 }
 0x46e   :  { %1795 = vst [vmem:[%s3080_s11 + $0x1a8] sm:$0xff] %v1715_v4 }
 0x473   :  { %v1717_v29 = vpop.f32.mrf.mxu0 }
 0x474   :  { %v1718_v43 = vadd.f32 %v2722_v52, %v1717_v29 }
 0x476   :  { %1796 = vst [vmem:[%s3080_s11 + $0x1b0] sm:$0xff] %v1718_v43 }
 0x47b   :  { %v1719_v31 = vpop.f32.mrf.mxu0 }
 0x47c   :  { %v1720_v35 = vadd.f32 %v2722_v52, %v1719_v31 }
 0x47e   :  { %1797 = vst [vmem:[%s3080_s11 + $0x1b8] sm:$0xff] %v1720_v35 }
 0x483   :  { %v1722_v40 = vpop.f32.mrf.mxu0 }
 0x484   :  { %v1723_v54 = vadd.f32 %v2022_v19, %v1722_v40 }
 0x486   :  { %1798 = vst [vmem:[%s3080_s11 + $0x1c0] sm:$0xff] %v1723_v54 }
 0x48b   :  { %v1724_v21 = vpop.f32.mrf.mxu0 }
 0x48c   :  { %v1725_v57 = vadd.f32 %v2022_v19, %v1724_v21 }
 0x48e   :  { %1799 = vst [vmem:[%s3080_s11 + $0x1c8] sm:$0xff] %v1725_v57 }
 0x493   :  { %v1727_v52 = vpop.f32.mrf.mxu0 }
 0x494   :  { %v1728_v47 = vadd.f32 %v2022_v19, %v1727_v52 }
 0x496   :  { %1800 = vst [vmem:[%s3080_s11 + $0x1d0] sm:$0xff] %v1728_v47 }
 0x49b   :  { %v1729_v7 = vpop.f32.mrf.mxu0 }
 0x49c   :  { %v1730_v44 = vadd.f32 %v2022_v19, %v1729_v7 }
 0x49e   :  { %1801 = vst [vmem:[%s3080_s11 + $0x1d8] sm:$0xff] %v1730_v44 }
 0x4a3   :  { %v1732_v45 = vpop.f32.mrf.mxu0 }
 0x4a4   :  { %v1733_v9 = vadd.f32 %v2022_v19, %v1732_v45 }
 0x4a6   :  { %1802 = vst [vmem:[%s3080_s11 + $0x1e0] sm:$0xff] %v1733_v9 }
 0x4ab   :  { %v1734_v6 = vpop.f32.mrf.mxu0 }
 0x4ac   :  { %v1735_v56 = vadd.f32 %v2022_v19, %v1734_v6 }
 0x4ae   :  { %1803 = vst [vmem:[%s3080_s11 + $0x1e8] sm:$0xff] %v1735_v56 }
 0x4b9   :  { %v1737_v48 = vpop.f32.mrf.mxu3 }
 0x4ba   :  { %v1738_v50 = vadd.f32 %v2022_v19, %v1737_v48 }
 0x4bc   :  { %1804 = vst [vmem:[%s3080_s11 + $0x1f0] sm:$0xff] %v1738_v50 }
 0x4c1   :  { %v1739_v51 = vpop.f32.mrf.mxu3 }
 0x4c2   :  { %v1740_v63 = vadd.f32 %v2022_v19, %v1739_v51 }
 0x4c4   :  { %1805 = vst [vmem:[%s3080_s11 + $0x1f8] sm:$0xff] %v1740_v63 }

</bundles_post_ra>
